<compile_context>
chip_gen: v5e
topology: v5e:2x2
jax: 0.10.0
libtpu: 0.0.40
codegen_flags: <defaults>
</compile_context>

<pallas_src>
import functools
import math

import jax
import jax.numpy as jnp
from jax.experimental import pallas as pl
from jax.experimental.pallas import tpu as pltpu

LANES = 128                      # padded output-feature width (lane-dense)
VMEM_LIMIT_BYTES = 32 * 1024 * 1024   # fits every generation (v5e/v6e/v7x)


# ------------------------------ Pallas kernels ------------------------------

def _conv1_pool_kernel(p_ref, w_ref, b_ref, o_ref):
    """conv1 (im2col matmul) + 2x2 maxpool + bias + ReLU for BB batch elements.

    p_ref: (4, BB*144, 25) bf16  patches, leading axis = pooling-window pos,
                                  rows ordered (batch, pooled_h, pooled_w)
    w_ref: (25, 128)       bf16  conv1 weight, out-features zero-padded
    b_ref: (1, 128)        f32   bias (zero-padded)
    o_ref: (BB*144, 128)   bf16  pooled activations, rows (batch, ph, pw)
    """
    # Running max over the 4 pool positions: only two (rows,128) f32
    # intermediates live at a time; max commutes with bias-add and ReLU.
    m = jnp.dot(p_ref[0], w_ref[...], preferred_element_type=jnp.float32)
    for g in range(1, 4):
        m = jnp.maximum(
            m, jnp.dot(p_ref[g], w_ref[...], preferred_element_type=jnp.float32))
    o_ref[...] = jnp.maximum(m + b_ref[...], 0.0).astype(o_ref.dtype)


def _conv2_fc_kernel(p_ref, w2_ref, b2_ref, wf1_ref, bf1_ref,
                     wf2_ref, bf2_ref, wf3_ref, bf3_ref, o_ref, *, bb):
    """conv2 + pool2 + fc1 + fc2 + fc3 for BB batch elements, all in VMEM.

    p_ref:  (4, 16*BB, 150) bf16  conv2 patches; rows ordered (hw, batch)
    w2_ref: (150, 128)      bf16
    wf1_ref:(16, 128, 128)  bf16  fc1 weight per spatial position hw
    o_ref:  (BB, 128)       f32   logits (padded to 128 lanes)
    """
    # conv2 matmuls per pooling position with a running max (= 2x2 max-pool).
    m = jnp.dot(p_ref[0], w2_ref[...], preferred_element_type=jnp.float32)
    for g in range(1, 4):
        m = jnp.maximum(
            m, jnp.dot(p_ref[g], w2_ref[...], preferred_element_type=jnp.float32))
    a = jnp.maximum(m + b2_ref[...], 0.0).astype(jnp.bfloat16)  # (16*BB,128)

    # fc1: sum over the 16 spatial positions of (BB,128)x(128,128) matmuls.
    # Rows of `a` are ordered (hw, batch), so each slice is contiguous.
    # The PyTorch NCHW .view(-1, 256) flatten is folded into wf1's layout.
    acc = jnp.zeros((bb, LANES), jnp.float32)
    for hw in range(16):
        acc = acc + jnp.dot(a[hw * bb:(hw + 1) * bb, :], wf1_ref[hw],
                            preferred_element_type=jnp.float32)
    h1 = jnp.maximum(acc + bf1_ref[...], 0.0).astype(jnp.bfloat16)
    h2 = jnp.maximum(
        jnp.dot(h1, wf2_ref[...], preferred_element_type=jnp.float32)
        + bf2_ref[...], 0.0).astype(jnp.bfloat16)
    o_ref[...] = (jnp.dot(h2, wf3_ref[...], preferred_element_type=jnp.float32)
                  + bf3_ref[...])


# ------------------------- host-side layout helpers -------------------------

def _pool_patch_groups(x_nhwc, kh, kw):
    """im2col patches grouped by 2x2 pooling-window position.

    x_nhwc: (B, H, W, C).  Valid conv (stride 1), then 2x2/2 max-pool.
    Returns (4, B, PH*PW, kh*kw*C): [pool_pos, batch, (pooled_h, pooled_w),
    (ki, kj, c)], matching weight.transpose(2, 3, 1, 0).reshape(kh*kw*C, OC).
    """
    B, H, W, C = x_nhwc.shape
    OH, OW = H - kh + 1, W - kw + 1
    PH, PW = OH // 2, OW // 2
    groups = []
    for pi in (0, 1):
        for pj in (0, 1):
            cols = []
            for ki in range(kh):
                for kj in range(kw):
                    r0, c0 = pi + ki, pj + kj
                    cols.append(x_nhwc[:, r0:r0 + 2 * PH:2, c0:c0 + 2 * PW:2, :])
            p = jnp.concatenate(cols, axis=-1)          # (B, PH, PW, kh*kw*C)
            groups.append(p.reshape(B, PH * PW, kh * kw * C))
    return jnp.stack(groups, axis=0)                    # (4, B, PH*PW, K)


def prepare_params(params):
    """One-time weight permutation / zero-padding to kernel layouts (bf16)."""
    def conv_w(w):            # (OC, C, KH, KW) -> (KH*KW*C, 128), zero-padded
        oc, c, kh, kw = w.shape
        wm = jnp.asarray(w, jnp.float32).transpose(2, 3, 1, 0).reshape(kh * kw * c, oc)
        return jnp.pad(wm, ((0, 0), (0, LANES - oc))).astype(jnp.bfloat16)

    def fc_w(w):              # (out, in) -> (128, 128) zero-padded W^T
        o, i = w.shape
        return jnp.pad(jnp.asarray(w, jnp.float32).T,
                       ((0, LANES - i), (0, LANES - o))).astype(jnp.bfloat16)

    def fc1_w(w):             # (120, 256), feature c*16+h*4+w -> (16,128,128)[hw,c,n]
        wt = jnp.asarray(w, jnp.float32).reshape(120, 16, 4, 4).transpose(2, 3, 1, 0)
        wt = wt.reshape(16, 16, 120)
        return jnp.pad(wt, ((0, 0), (0, LANES - 16),
                            (0, LANES - 120))).astype(jnp.bfloat16)

    def bias(b):              # (n,) -> (1, 128) f32 zero-padded
        return jnp.pad(jnp.asarray(b, jnp.float32),
                       (0, LANES - b.shape[0])).reshape(1, LANES)

    return {
        "w1": conv_w(params["w1"]), "b1": bias(params["b1"]),
        "w2": conv_w(params["w2"]), "b2": bias(params["b2"]),
        "wf1": fc1_w(params["fc1_w"]), "bf1": bias(params["fc1_b"]),
        "wf2": fc_w(params["fc2_w"]), "bf2": bias(params["fc2_b"]),
        "wf3": fc_w(params["fc3_w"]), "bf3": bias(params["fc3_b"]),
    }


# --------------------------------- forward ----------------------------------

def fashion_cnn_forward(x, kp, *, block_batch=32):
    """Forward pass matching PyTorch FashionCNN.  x: (B, 1, 28, 28) NCHW."""
    B = x.shape[0]
    bb = B if B <= block_batch else block_batch        # BB: batch block size
    b_pad = ((B + bb - 1) // bb) * bb
    if b_pad != B:
        x = jnp.pad(x, ((0, b_pad - B), (0, 0), (0, 0), (0, 0)))
    nb = b_pad // bb

    cparams = pltpu.CompilerParams(dimension_semantics=("parallel",),
                                   vmem_limit_bytes=VMEM_LIMIT_BYTES)

    # ---- layer 1: conv1(1->6, k5) + ReLU + maxpool(2,2), batch-blocked ------
    x_nhwc = x.astype(jnp.float32).transpose(0, 2, 3, 1)           # (B,28,28,1)
    g1 = _pool_patch_groups(x_nhwc, 5, 5)                          # (4,B,144,25)
    p1 = (g1.reshape(4, nb, bb, 144, 25).transpose(1, 0, 2, 3, 4)
            .reshape(nb * 4, bb * 144, 25).astype(jnp.bfloat16))
    rows1 = bb * 144
    out1 = pl.pallas_call(
        _conv1_pool_kernel,
        out_shape=jax.ShapeDtypeStruct((b_pad * 144, LANES), jnp.bfloat16),
        grid=(nb,),
        in_specs=[
            pl.BlockSpec((4, rows1, 25), lambda i: (i, 0, 0)),
            pl.BlockSpec((25, LANES), lambda i: (0, 0)),
            pl.BlockSpec((1, LANES), lambda i: (0, 0)),
        ],
        out_specs=pl.BlockSpec((rows1, LANES), lambda i: (i, 0)),
        compiler_params=cparams,
    )(p1, kp["w1"], kp["b1"])
    a1 = out1.reshape(b_pad, 12, 12, LANES)[:, :, :, :6]            # bf16 NHWC

    # ---- layer 2 + classifier head: conv2 + ReLU + pool + fc1/fc2/fc3 -------
    g2 = _pool_patch_groups(a1, 5, 5)                               # (4,B,16,150)
    # Reorder rows within each batch block to (pool_pos, hw, batch).
    p2 = (g2.transpose(0, 2, 1, 3).reshape(4, 16, nb, bb, 150)
            .transpose(2, 0, 1, 3, 4)
            .reshape(nb * 4, 16 * bb, 150).astype(jnp.bfloat16))
    logits = pl.pallas_call(
        functools.partial(_conv2_fc_kernel, bb=bb),
        out_shape=jax.ShapeDtypeStruct((b_pad, LANES), jnp.float32),
        grid=(nb,),
        in_specs=[
            pl.BlockSpec((4, 16 * bb, 150), lambda i: (i, 0, 0)),
            pl.BlockSpec((150, LANES), lambda i: (0, 0)),
            pl.BlockSpec((1, LANES), lambda i: (0, 0)),
            pl.BlockSpec((16, LANES, LANES), lambda i: (0, 0, 0)),
            pl.BlockSpec((1, LANES), lambda i: (0, 0)),
            pl.BlockSpec((LANES, LANES), lambda i: (0, 0)),
            pl.BlockSpec((1, LANES), lambda i: (0, 0)),
            pl.BlockSpec((LANES, LANES), lambda i: (0, 0)),
            pl.BlockSpec((1, LANES), lambda i: (0, 0)),
        ],
        out_specs=pl.BlockSpec((bb, LANES), lambda i: (i, 0)),
        compiler_params=cparams,
    )(p2, kp["w2"], kp["b2"], kp["wf1"], kp["bf1"],
      kp["wf2"], kp["bf2"], kp["wf3"], kp["bf3"])
    return logits[:B, :10]


# ------------------------- pure-JAX reference check --------------------------

def _reference_forward(x, params):
    def conv(h, w, b):
        y = jax.lax.conv_general_dilated(
            h, w, window_strides=(1, 1), padding="VALID",
            dimension_numbers=("NCHW", "OIHW", "NCHW"))
        return y + b.reshape(1, -1, 1, 1)

    def pool(h):
        return jax.lax.reduce_window(h, -jnp.inf, jax.lax.max,
                                     (1, 1, 2, 2), (1, 1, 2, 2), "VALID")

    h = pool(jax.nn.relu(conv(x, params["w1"], params["b1"])))
    h = pool(jax.nn.relu(conv(h, params["w2"], params["b2"])))
    h = h.reshape(h.shape[0], -1)
    h = jax.nn.relu(h @ params["fc1_w"].T + params["fc1_b"])
    h = jax.nn.relu(h @ params["fc2_w"].T + params["fc2_b"])
    return h @ params["fc3_w"].T + params["fc3_b"]


# --------------------------- deterministic params ----------------------------

def init_params(key):
    """Deterministic PyTorch-style (uniform +/- 1/sqrt(fan_in)) init."""
    ks = jax.random.split(key, 10)

    def u(k, shape, fan_in):
        bound = 1.0 / math.sqrt(fan_in)
        return jax.random.uniform(k, shape, jnp.float32, -bound, bound)

    return {
        "w1": u(ks[0], (6, 1, 5, 5), 1 * 5 * 5),
        "b1": u(ks[1], (6,), 1 * 5 * 5),
        "w2": u(ks[2], (16, 6, 5, 5), 6 * 5 * 5),
        "b2": u(ks[3], (16,), 6 * 5 * 5),
        "fc1_w": u(ks[4], (120, 256), 256),   # PyTorch Linear: (out, in)
        "fc1_b": u(ks[5], (120,), 256),
        "fc2_w": u(ks[6], (84, 120), 120),
        "fc2_b": u(ks[7], (84,), 120),
        "fc3_w": u(ks[8], (10, 84), 84),
        "fc3_b": u(ks[9], (10,), 84),
    }


if __name__ == "__main__":
    key = jax.random.PRNGKey(0)
    pkey, xkey = jax.random.split(key)
    params = init_params(pkey)
    # Spatial size must be 28x28 so the flatten sees 16*4*4 features.
    x = jax.random.normal(xkey, (2, 1, 28, 28), dtype=jnp.float32)

    kparams = prepare_params(params)                 # hoisted: run once
    logits = jax.jit(fashion_cnn_forward)(x, kparams)
    jax.block_until_ready(logits)
    assert logits.shape == (2, 10) and logits.dtype == jnp.float32

    ref = jax.jit(_reference_forward)(x, params)
    jax.block_until_ready(ref)
    assert jnp.allclose(logits, ref, atol=2e-2, rtol=2e-2), (
        float(jnp.max(jnp.abs(logits - ref))))
    print("KERNEL_OK")
</pallas_src>

<mosaic_0001>
module attributes {stable_mosaic.version = 11 : i64} {
  func.func @_conv1_pool_kernel(%arg0: i32, %arg1: memref<4x288x25xbf16, #tpu.memory_space<vmem>>, %arg2: memref<25x128xbf16, #tpu.memory_space<vmem>>, %arg3: memref<1x128xf32, #tpu.memory_space<vmem>>, %arg4: memref<288x128xbf16, #tpu.memory_space<vmem>>) attributes {dimension_semantics = [#tpu.dimension_semantics<parallel>], iteration_bounds = array<i64: 1>, scalar_prefetch = 0 : i64, scratch_operands = 0 : i64, tpu.core_type = #tpu.core_type<tc>, window_params = [{transform_indices = @transform_0, window_bounds = array<i64: 4, 288, 25>}, {pipeline_mode = #tpu.pipeline_mode<synchronous>, transform_indices = @transform_1, window_bounds = array<i64: 25, 128>}, {pipeline_mode = #tpu.pipeline_mode<synchronous>, transform_indices = @transform_2, window_bounds = array<i64: 1, 128>}, {transform_indices = @transform_3, window_bounds = array<i64: 288, 128>}]} {
    %c0 = arith.constant 0 : index
    %c0_0 = arith.constant 0 : index
    %c0_1 = arith.constant 0 : index
    %0 = vector.load %arg1[%c0, %c0_0, %c0_1] : memref<4x288x25xbf16, #tpu.memory_space<vmem>>, vector<1x288x25xbf16>
    %1 = vector.shape_cast %0 : vector<1x288x25xbf16> to vector<288x25xbf16>
    %c0_2 = arith.constant 0 : index
    %c0_3 = arith.constant 0 : index
    %2 = vector.load %arg2[%c0_2, %c0_3] : memref<25x128xbf16, #tpu.memory_space<vmem>>, vector<25x128xbf16>
    %cst = arith.constant dense<0.000000e+00> : vector<288x128xf32>
    %3 = tpu.matmul %1, %2, %cst {dimension_numbers = #tpu.dot_dimension_numbers<[1], [0], [0], [1], [0, 0, 1, 1], [], []>} : vector<288x25xbf16>, vector<25x128xbf16>, vector<288x128xf32> -> vector<288x128xf32>
    %c1 = arith.constant 1 : index
    %c0_4 = arith.constant 0 : index
    %c0_5 = arith.constant 0 : index
    %4 = vector.load %arg1[%c1, %c0_4, %c0_5] : memref<4x288x25xbf16, #tpu.memory_space<vmem>>, vector<1x288x25xbf16>
    %5 = vector.shape_cast %4 : vector<1x288x25xbf16> to vector<288x25xbf16>
    %c0_6 = arith.constant 0 : index
    %c0_7 = arith.constant 0 : index
    %6 = vector.load %arg2[%c0_6, %c0_7] : memref<25x128xbf16, #tpu.memory_space<vmem>>, vector<25x128xbf16>
    %cst_8 = arith.constant dense<0.000000e+00> : vector<288x128xf32>
    %7 = tpu.matmul %5, %6, %cst_8 {dimension_numbers = #tpu.dot_dimension_numbers<[1], [0], [0], [1], [0, 0, 1, 1], [], []>} : vector<288x25xbf16>, vector<25x128xbf16>, vector<288x128xf32> -> vector<288x128xf32>
    %8 = arith.maximumf %3, %7 : vector<288x128xf32>
    %c2 = arith.constant 2 : index
    %c0_9 = arith.constant 0 : index
    %c0_10 = arith.constant 0 : index
    %9 = vector.load %arg1[%c2, %c0_9, %c0_10] : memref<4x288x25xbf16, #tpu.memory_space<vmem>>, vector<1x288x25xbf16>
    %10 = vector.shape_cast %9 : vector<1x288x25xbf16> to vector<288x25xbf16>
    %c0_11 = arith.constant 0 : index
    %c0_12 = arith.constant 0 : index
    %11 = vector.load %arg2[%c0_11, %c0_12] : memref<25x128xbf16, #tpu.memory_space<vmem>>, vector<25x128xbf16>
    %cst_13 = arith.constant dense<0.000000e+00> : vector<288x128xf32>
    %12 = tpu.matmul %10, %11, %cst_13 {dimension_numbers = #tpu.dot_dimension_numbers<[1], [0], [0], [1], [0, 0, 1, 1], [], []>} : vector<288x25xbf16>, vector<25x128xbf16>, vector<288x128xf32> -> vector<288x128xf32>
    %13 = arith.maximumf %8, %12 : vector<288x128xf32>
    %c3 = arith.constant 3 : index
    %c0_14 = arith.constant 0 : index
    %c0_15 = arith.constant 0 : index
    %14 = vector.load %arg1[%c3, %c0_14, %c0_15] : memref<4x288x25xbf16, #tpu.memory_space<vmem>>, vector<1x288x25xbf16>
    %15 = vector.shape_cast %14 : vector<1x288x25xbf16> to vector<288x25xbf16>
    %c0_16 = arith.constant 0 : index
    %c0_17 = arith.constant 0 : index
    %16 = vector.load %arg2[%c0_16, %c0_17] : memref<25x128xbf16, #tpu.memory_space<vmem>>, vector<25x128xbf16>
    %cst_18 = arith.constant dense<0.000000e+00> : vector<288x128xf32>
    %17 = tpu.matmul %15, %16, %cst_18 {dimension_numbers = #tpu.dot_dimension_numbers<[1], [0], [0], [1], [0, 0, 1, 1], [], []>} : vector<288x25xbf16>, vector<25x128xbf16>, vector<288x128xf32> -> vector<288x128xf32>
    %18 = arith.maximumf %13, %17 : vector<288x128xf32>
    %c0_19 = arith.constant 0 : index
    %c0_20 = arith.constant 0 : index
    %19 = vector.load %arg3[%c0_19, %c0_20] : memref<1x128xf32, #tpu.memory_space<vmem>>, vector<1x128xf32>
    %20 = vector.broadcast %19 : vector<1x128xf32> to vector<288x128xf32>
    %21 = arith.addf %18, %20 : vector<288x128xf32>
    %cst_21 = arith.constant 0.000000e+00 : f32
    %22 = vector.broadcast %cst_21 : f32 to vector<288x128xf32>
    %23 = arith.maximumf %21, %22 : vector<288x128xf32>
    %24 = arith.truncf %23 : vector<288x128xf32> to vector<288x128xbf16>
    %c0_22 = arith.constant 0 : index
    %c0_23 = arith.constant 0 : index
    %25 = vector.load %arg4[%c0_22, %c0_23] : memref<288x128xbf16, #tpu.memory_space<vmem>>, vector<288x128xbf16>
    tpu.vector_store %arg4[%c0_22, %c0_23], %24 {strides = array<i32>} : memref<288x128xbf16, #tpu.memory_space<vmem>>, vector<288x128xbf16>,
    return
  }
  func.func @transform_0(%arg0: i32) -> (i32, i32, i32) {
    %c0_i32 = arith.constant 0 : i32
    %c0_i32_0 = arith.constant 0 : i32
    %c0_i32_1 = arith.constant 0 : i32
    return %arg0, %c0_i32, %c0_i32_0 : i32, i32, i32
  }
  func.func @transform_1(%arg0: i32) -> (i32, i32) {
    %c0_i32 = arith.constant 0 : i32
    %c0_i32_0 = arith.constant 0 : i32
    %c0_i32_1 = arith.constant 0 : i32
    return %c0_i32, %c0_i32_0 : i32, i32
  }
  func.func @transform_2(%arg0: i32) -> (i32, i32) {
    %c0_i32 = arith.constant 0 : i32
    %c0_i32_0 = arith.constant 0 : i32
    %c0_i32_1 = arith.constant 0 : i32
    return %c0_i32, %c0_i32_0 : i32, i32
  }
  func.func @transform_3(%arg0: i32) -> (i32, i32) {
    %c0_i32 = arith.constant 0 : i32
    %c0_i32_0 = arith.constant 0 : i32
    return %arg0, %c0_i32 : i32, i32
  }
}

module attributes {stable_mosaic.version = 11 : i64} {
  func.func @_conv2_fc_kernel(%arg0: i32, %arg1: memref<4x32x150xbf16, #tpu.memory_space<vmem>>, %arg2: memref<150x128xbf16, #tpu.memory_space<vmem>>, %arg3: memref<1x128xf32, #tpu.memory_space<vmem>>, %arg4: memref<16x128x128xbf16, #tpu.memory_space<vmem>>, %arg5: memref<1x128xf32, #tpu.memory_space<vmem>>, %arg6: memref<128x128xbf16, #tpu.memory_space<vmem>>, %arg7: memref<1x128xf32, #tpu.memory_space<vmem>>, %arg8: memref<128x128xbf16, #tpu.memory_space<vmem>>, %arg9: memref<1x128xf32, #tpu.memory_space<vmem>>, %arg10: memref<2x128xf32, #tpu.memory_space<vmem>>) attributes {dimension_semantics = [#tpu.dimension_semantics<parallel>], iteration_bounds = array<i64: 1>, scalar_prefetch = 0 : i64, scratch_operands = 0 : i64, tpu.core_type = #tpu.core_type<tc>, window_params = [{transform_indices = @transform_0, window_bounds = array<i64: 4, 32, 150>}, {pipeline_mode = #tpu.pipeline_mode<synchronous>, transform_indices = @transform_1, window_bounds = array<i64: 150, 128>}, {pipeline_mode = #tpu.pipeline_mode<synchronous>, transform_indices = @transform_2, window_bounds = array<i64: 1, 128>}, {pipeline_mode = #tpu.pipeline_mode<synchronous>, transform_indices = @transform_3, window_bounds = array<i64: 16, 128, 128>}, {pipeline_mode = #tpu.pipeline_mode<synchronous>, transform_indices = @transform_4, window_bounds = array<i64: 1, 128>}, {pipeline_mode = #tpu.pipeline_mode<synchronous>, transform_indices = @transform_5, window_bounds = array<i64: 128, 128>}, {pipeline_mode = #tpu.pipeline_mode<synchronous>, transform_indices = @transform_6, window_bounds = array<i64: 1, 128>}, {pipeline_mode = #tpu.pipeline_mode<synchronous>, transform_indices = @transform_7, window_bounds = array<i64: 128, 128>}, {pipeline_mode = #tpu.pipeline_mode<synchronous>, transform_indices = @transform_8, window_bounds = array<i64: 1, 128>}, {transform_indices = @transform_9, window_bounds = array<i64: 2, 128>}]} {
    %c0 = arith.constant 0 : index
    %c0_0 = arith.constant 0 : index
    %c0_1 = arith.constant 0 : index
    %0 = vector.load %arg1[%c0, %c0_0, %c0_1] : memref<4x32x150xbf16, #tpu.memory_space<vmem>>, vector<1x32x150xbf16>
    %1 = vector.shape_cast %0 : vector<1x32x150xbf16> to vector<32x150xbf16>
    %c0_2 = arith.constant 0 : index
    %c0_3 = arith.constant 0 : index
    %2 = vector.load %arg2[%c0_2, %c0_3] : memref<150x128xbf16, #tpu.memory_space<vmem>>, vector<150x128xbf16>
    %cst = arith.constant dense<0.000000e+00> : vector<32x128xf32>
    %3 = tpu.matmul %1, %2, %cst {dimension_numbers = #tpu.dot_dimension_numbers<[1], [0], [0], [1], [0, 0, 1, 1], [], []>} : vector<32x150xbf16>, vector<150x128xbf16>, vector<32x128xf32> -> vector<32x128xf32>
    %c1 = arith.constant 1 : index
    %c0_4 = arith.constant 0 : index
    %c0_5 = arith.constant 0 : index
    %4 = vector.load %arg1[%c1, %c0_4, %c0_5] : memref<4x32x150xbf16, #tpu.memory_space<vmem>>, vector<1x32x150xbf16>
    %5 = vector.shape_cast %4 : vector<1x32x150xbf16> to vector<32x150xbf16>
    %c0_6 = arith.constant 0 : index
    %c0_7 = arith.constant 0 : index
    %6 = vector.load %arg2[%c0_6, %c0_7] : memref<150x128xbf16, #tpu.memory_space<vmem>>, vector<150x128xbf16>
    %cst_8 = arith.constant dense<0.000000e+00> : vector<32x128xf32>
    %7 = tpu.matmul %5, %6, %cst_8 {dimension_numbers = #tpu.dot_dimension_numbers<[1], [0], [0], [1], [0, 0, 1, 1], [], []>} : vector<32x150xbf16>, vector<150x128xbf16>, vector<32x128xf32> -> vector<32x128xf32>
    %8 = arith.maximumf %3, %7 : vector<32x128xf32>
    %c2 = arith.constant 2 : index
    %c0_9 = arith.constant 0 : index
    %c0_10 = arith.constant 0 : index
    %9 = vector.load %arg1[%c2, %c0_9, %c0_10] : memref<4x32x150xbf16, #tpu.memory_space<vmem>>, vector<1x32x150xbf16>
    %10 = vector.shape_cast %9 : vector<1x32x150xbf16> to vector<32x150xbf16>
    %c0_11 = arith.constant 0 : index
    %c0_12 = arith.constant 0 : index
    %11 = vector.load %arg2[%c0_11, %c0_12] : memref<150x128xbf16, #tpu.memory_space<vmem>>, vector<150x128xbf16>
    %cst_13 = arith.constant dense<0.000000e+00> : vector<32x128xf32>
    %12 = tpu.matmul %10, %11, %cst_13 {dimension_numbers = #tpu.dot_dimension_numbers<[1], [0], [0], [1], [0, 0, 1, 1], [], []>} : vector<32x150xbf16>, vector<150x128xbf16>, vector<32x128xf32> -> vector<32x128xf32>
    %13 = arith.maximumf %8, %12 : vector<32x128xf32>
    %c3 = arith.constant 3 : index
    %c0_14 = arith.constant 0 : index
    %c0_15 = arith.constant 0 : index
    %14 = vector.load %arg1[%c3, %c0_14, %c0_15] : memref<4x32x150xbf16, #tpu.memory_space<vmem>>, vector<1x32x150xbf16>
    %15 = vector.shape_cast %14 : vector<1x32x150xbf16> to vector<32x150xbf16>
    %c0_16 = arith.constant 0 : index
    %c0_17 = arith.constant 0 : index
    %16 = vector.load %arg2[%c0_16, %c0_17] : memref<150x128xbf16, #tpu.memory_space<vmem>>, vector<150x128xbf16>
    %cst_18 = arith.constant dense<0.000000e+00> : vector<32x128xf32>
    %17 = tpu.matmul %15, %16, %cst_18 {dimension_numbers = #tpu.dot_dimension_numbers<[1], [0], [0], [1], [0, 0, 1, 1], [], []>} : vector<32x150xbf16>, vector<150x128xbf16>, vector<32x128xf32> -> vector<32x128xf32>
    %18 = arith.maximumf %13, %17 : vector<32x128xf32>
    %c0_19 = arith.constant 0 : index
    %c0_20 = arith.constant 0 : index
    %19 = vector.load %arg3[%c0_19, %c0_20] : memref<1x128xf32, #tpu.memory_space<vmem>>, vector<1x128xf32>
    %20 = vector.broadcast %19 : vector<1x128xf32> to vector<32x128xf32>
    %21 = arith.addf %18, %20 : vector<32x128xf32>
    %cst_21 = arith.constant 0.000000e+00 : f32
    %22 = vector.broadcast %cst_21 : f32 to vector<32x128xf32>
    %23 = arith.maximumf %21, %22 : vector<32x128xf32>
    %24 = arith.truncf %23 : vector<32x128xf32> to vector<32x128xbf16>
    %cst_22 = arith.constant 0.000000e+00 : f32
    %25 = vector.broadcast %cst_22 : f32 to vector<2x128xf32>
    %26 = vector.extract_strided_slice %24 {offsets = [0, 0], sizes = [2, 128], strides = [1, 1]} : vector<32x128xbf16> to vector<2x128xbf16>
    %c0_23 = arith.constant 0 : index
    %c0_24 = arith.constant 0 : index
    %c0_25 = arith.constant 0 : index
    %27 = vector.load %arg4[%c0_23, %c0_24, %c0_25] : memref<16x128x128xbf16, #tpu.memory_space<vmem>>, vector<1x128x128xbf16>
    %28 = vector.shape_cast %27 : vector<1x128x128xbf16> to vector<128x128xbf16>
    %cst_26 = arith.constant dense<0.000000e+00> : vector<2x128xf32>
    %29 = tpu.matmul %26, %28, %cst_26 {dimension_numbers = #tpu.dot_dimension_numbers<[1], [0], [0], [1], [0, 0, 1, 1], [], []>} : vector<2x128xbf16>, vector<128x128xbf16>, vector<2x128xf32> -> vector<2x128xf32>
    %30 = arith.addf %25, %29 : vector<2x128xf32>
    %31 = vector.extract_strided_slice %24 {offsets = [2, 0], sizes = [2, 128], strides = [1, 1]} : vector<32x128xbf16> to vector<2x128xbf16>
    %c1_27 = arith.constant 1 : index
    %c0_28 = arith.constant 0 : index
    %c0_29 = arith.constant 0 : index
    %32 = vector.load %arg4[%c1_27, %c0_28, %c0_29] : memref<16x128x128xbf16, #tpu.memory_space<vmem>>, vector<1x128x128xbf16>
    %33 = vector.shape_cast %32 : vector<1x128x128xbf16> to vector<128x128xbf16>
    %cst_30 = arith.constant dense<0.000000e+00> : vector<2x128xf32>
    %34 = tpu.matmul %31, %33, %cst_30 {dimension_numbers = #tpu.dot_dimension_numbers<[1], [0], [0], [1], [0, 0, 1, 1], [], []>} : vector<2x128xbf16>, vector<128x128xbf16>, vector<2x128xf32> -> vector<2x128xf32>
    %35 = arith.addf %30, %34 : vector<2x128xf32>
    %36 = vector.extract_strided_slice %24 {offsets = [4, 0], sizes = [2, 128], strides = [1, 1]} : vector<32x128xbf16> to vector<2x128xbf16>
    %c2_31 = arith.constant 2 : index
    %c0_32 = arith.constant 0 : index
    %c0_33 = arith.constant 0 : index
    %37 = vector.load %arg4[%c2_31, %c0_32, %c0_33] : memref<16x128x128xbf16, #tpu.memory_space<vmem>>, vector<1x128x128xbf16>
    %38 = vector.shape_cast %37 : vector<1x128x128xbf16> to vector<128x128xbf16>
    %cst_34 = arith.constant dense<0.000000e+00> : vector<2x128xf32>
    %39 = tpu.matmul %36, %38, %cst_34 {dimension_numbers = #tpu.dot_dimension_numbers<[1], [0], [0], [1], [0, 0, 1, 1], [], []>} : vector<2x128xbf16>, vector<128x128xbf16>, vector<2x128xf32> -> vector<2x128xf32>
    %40 = arith.addf %35, %39 : vector<2x128xf32>
    %41 = vector.extract_strided_slice %24 {offsets = [6, 0], sizes = [2, 128], strides = [1, 1]} : vector<32x128xbf16> to vector<2x128xbf16>
    %c3_35 = arith.constant 3 : index
    %c0_36 = arith.constant 0 : index
    %c0_37 = arith.constant 0 : index
    %42 = vector.load %arg4[%c3_35, %c0_36, %c0_37] : memref<16x128x128xbf16, #tpu.memory_space<vmem>>, vector<1x128x128xbf16>
    %43 = vector.shape_cast %42 : vector<1x128x128xbf16> to vector<128x128xbf16>
    %cst_38 = arith.constant dense<0.000000e+00> : vector<2x128xf32>
    %44 = tpu.matmul %41, %43, %cst_38 {dimension_numbers = #tpu.dot_dimension_numbers<[1], [0], [0], [1], [0, 0, 1, 1], [], []>} : vector<2x128xbf16>, vector<128x128xbf16>, vector<2x128xf32> -> vector<2x128xf32>
    %45 = arith.addf %40, %44 : vector<2x128xf32>
    %46 = vector.extract_strided_slice %24 {offsets = [8, 0], sizes = [2, 128], strides = [1, 1]} : vector<32x128xbf16> to vector<2x128xbf16>
    %c4 = arith.constant 4 : index
    %c0_39 = arith.constant 0 : index
    %c0_40 = arith.constant 0 : index
    %47 = vector.load %arg4[%c4, %c0_39, %c0_40] : memref<16x128x128xbf16, #tpu.memory_space<vmem>>, vector<1x128x128xbf16>
    %48 = vector.shape_cast %47 : vector<1x128x128xbf16> to vector<128x128xbf16>
    %cst_41 = arith.constant dense<0.000000e+00> : vector<2x128xf32>
    %49 = tpu.matmul %46, %48, %cst_41 {dimension_numbers = #tpu.dot_dimension_numbers<[1], [0], [0], [1], [0, 0, 1, 1], [], []>} : vector<2x128xbf16>, vector<128x128xbf16>, vector<2x128xf32> -> vector<2x128xf32>
    %50 = arith.addf %45, %49 : vector<2x128xf32>
    %51 = vector.extract_strided_slice %24 {offsets = [10, 0], sizes = [2, 128], strides = [1, 1]} : vector<32x128xbf16> to vector<2x128xbf16>
    %c5 = arith.constant 5 : index
    %c0_42 = arith.constant 0 : index
    %c0_43 = arith.constant 0 : index
    %52 = vector.load %arg4[%c5, %c0_42, %c0_43] : memref<16x128x128xbf16, #tpu.memory_space<vmem>>, vector<1x128x128xbf16>
    %53 = vector.shape_cast %52 : vector<1x128x128xbf16> to vector<128x128xbf16>
    %cst_44 = arith.constant dense<0.000000e+00> : vector<2x128xf32>
    %54 = tpu.matmul %51, %53, %cst_44 {dimension_numbers = #tpu.dot_dimension_numbers<[1], [0], [0], [1], [0, 0, 1, 1], [], []>} : vector<2x128xbf16>, vector<128x128xbf16>, vector<2x128xf32> -> vector<2x128xf32>
    %55 = arith.addf %50, %54 : vector<2x128xf32>
    %56 = vector.extract_strided_slice %24 {offsets = [12, 0], sizes = [2, 128], strides = [1, 1]} : vector<32x128xbf16> to vector<2x128xbf16>
    %c6 = arith.constant 6 : index
    %c0_45 = arith.constant 0 : index
    %c0_46 = arith.constant 0 : index
    %57 = vector.load %arg4[%c6, %c0_45, %c0_46] : memref<16x128x128xbf16, #tpu.memory_space<vmem>>, vector<1x128x128xbf16>
    %58 = vector.shape_cast %57 : vector<1x128x128xbf16> to vector<128x128xbf16>
    %cst_47 = arith.constant dense<0.000000e+00> : vector<2x128xf32>
    %59 = tpu.matmul %56, %58, %cst_47 {dimension_numbers = #tpu.dot_dimension_numbers<[1], [0], [0], [1], [0, 0, 1, 1], [], []>} : vector<2x128xbf16>, vector<128x128xbf16>, vector<2x128xf32> -> vector<2x128xf32>
    %60 = arith.addf %55, %59 : vector<2x128xf32>
    %61 = vector.extract_strided_slice %24 {offsets = [14, 0], sizes = [2, 128], strides = [1, 1]} : vector<32x128xbf16> to vector<2x128xbf16>
    %c7 = arith.constant 7 : index
    %c0_48 = arith.constant 0 : index
    %c0_49 = arith.constant 0 : index
    %62 = vector.load %arg4[%c7, %c0_48, %c0_49] : memref<16x128x128xbf16, #tpu.memory_space<vmem>>, vector<1x128x128xbf16>
    %63 = vector.shape_cast %62 : vector<1x128x128xbf16> to vector<128x128xbf16>
    %cst_50 = arith.constant dense<0.000000e+00> : vector<2x128xf32>
    %64 = tpu.matmul %61, %63, %cst_50 {dimension_numbers = #tpu.dot_dimension_numbers<[1], [0], [0], [1], [0, 0, 1, 1], [], []>} : vector<2x128xbf16>, vector<128x128xbf16>, vector<2x128xf32> -> vector<2x128xf32>
    %65 = arith.addf %60, %64 : vector<2x128xf32>
    %66 = vector.extract_strided_slice %24 {offsets = [16, 0], sizes = [2, 128], strides = [1, 1]} : vector<32x128xbf16> to vector<2x128xbf16>
    %c8 = arith.constant 8 : index
    %c0_51 = arith.constant 0 : index
    %c0_52 = arith.constant 0 : index
    %67 = vector.load %arg4[%c8, %c0_51, %c0_52] : memref<16x128x128xbf16, #tpu.memory_space<vmem>>, vector<1x128x128xbf16>
    %68 = vector.shape_cast %67 : vector<1x128x128xbf16> to vector<128x128xbf16>
    %cst_53 = arith.constant dense<0.000000e+00> : vector<2x128xf32>
    %69 = tpu.matmul %66, %68, %cst_53 {dimension_numbers = #tpu.dot_dimension_numbers<[1], [0], [0], [1], [0, 0, 1, 1], [], []>} : vector<2x128xbf16>, vector<128x128xbf16>, vector<2x128xf32> -> vector<2x128xf32>
    %70 = arith.addf %65, %69 : vector<2x128xf32>
    %71 = vector.extract_strided_slice %24 {offsets = [18, 0], sizes = [2, 128], strides = [1, 1]} : vector<32x128xbf16> to vector<2x128xbf16>
    %c9 = arith.constant 9 : index
    %c0_54 = arith.constant 0 : index
    %c0_55 = arith.constant 0 : index
    %72 = vector.load %arg4[%c9, %c0_54, %c0_55] : memref<16x128x128xbf16, #tpu.memory_space<vmem>>, vector<1x128x128xbf16>
    %73 = vector.shape_cast %72 : vector<1x128x128xbf16> to vector<128x128xbf16>
    %cst_56 = arith.constant dense<0.000000e+00> : vector<2x128xf32>
    %74 = tpu.matmul %71, %73, %cst_56 {dimension_numbers = #tpu.dot_dimension_numbers<[1], [0], [0], [1], [0, 0, 1, 1], [], []>} : vector<2x128xbf16>, vector<128x128xbf16>, vector<2x128xf32> -> vector<2x128xf32>
    %75 = arith.addf %70, %74 : vector<2x128xf32>
    %76 = vector.extract_strided_slice %24 {offsets = [20, 0], sizes = [2, 128], strides = [1, 1]} : vector<32x128xbf16> to vector<2x128xbf16>
    %c10 = arith.constant 10 : index
    %c0_57 = arith.constant 0 : index
    %c0_58 = arith.constant 0 : index
    %77 = vector.load %arg4[%c10, %c0_57, %c0_58] : memref<16x128x128xbf16, #tpu.memory_space<vmem>>, vector<1x128x128xbf16>
    %78 = vector.shape_cast %77 : vector<1x128x128xbf16> to vector<128x128xbf16>
    %cst_59 = arith.constant dense<0.000000e+00> : vector<2x128xf32>
    %79 = tpu.matmul %76, %78, %cst_59 {dimension_numbers = #tpu.dot_dimension_numbers<[1], [0], [0], [1], [0, 0, 1, 1], [], []>} : vector<2x128xbf16>, vector<128x128xbf16>, vector<2x128xf32> -> vector<2x128xf32>
    %80 = arith.addf %75, %79 : vector<2x128xf32>
    %81 = vector.extract_strided_slice %24 {offsets = [22, 0], sizes = [2, 128], strides = [1, 1]} : vector<32x128xbf16> to vector<2x128xbf16>
    %c11 = arith.constant 11 : index
    %c0_60 = arith.constant 0 : index
    %c0_61 = arith.constant 0 : index
    %82 = vector.load %arg4[%c11, %c0_60, %c0_61] : memref<16x128x128xbf16, #tpu.memory_space<vmem>>, vector<1x128x128xbf16>
    %83 = vector.shape_cast %82 : vector<1x128x128xbf16> to vector<128x128xbf16>
    %cst_62 = arith.constant dense<0.000000e+00> : vector<2x128xf32>
    %84 = tpu.matmul %81, %83, %cst_62 {dimension_numbers = #tpu.dot_dimension_numbers<[1], [0], [0], [1], [0, 0, 1, 1], [], []>} : vector<2x128xbf16>, vector<128x128xbf16>, vector<2x128xf32> -> vector<2x128xf32>
    %85 = arith.addf %80, %84 : vector<2x128xf32>
    %86 = vector.extract_strided_slice %24 {offsets = [24, 0], sizes = [2, 128], strides = [1, 1]} : vector<32x128xbf16> to vector<2x128xbf16>
    %c12 = arith.constant 12 : index
    %c0_63 = arith.constant 0 : index
    %c0_64 = arith.constant 0 : index
    %87 = vector.load %arg4[%c12, %c0_63, %c0_64] : memref<16x128x128xbf16, #tpu.memory_space<vmem>>, vector<1x128x128xbf16>
    %88 = vector.shape_cast %87 : vector<1x128x128xbf16> to vector<128x128xbf16>
    %cst_65 = arith.constant dense<0.000000e+00> : vector<2x128xf32>
    %89 = tpu.matmul %86, %88, %cst_65 {dimension_numbers = #tpu.dot_dimension_numbers<[1], [0], [0], [1], [0, 0, 1, 1], [], []>} : vector<2x128xbf16>, vector<128x128xbf16>, vector<2x128xf32> -> vector<2x128xf32>
    %90 = arith.addf %85, %89 : vector<2x128xf32>
    %91 = vector.extract_strided_slice %24 {offsets = [26, 0], sizes = [2, 128], strides = [1, 1]} : vector<32x128xbf16> to vector<2x128xbf16>
    %c13 = arith.constant 13 : index
    %c0_66 = arith.constant 0 : index
    %c0_67 = arith.constant 0 : index
    %92 = vector.load %arg4[%c13, %c0_66, %c0_67] : memref<16x128x128xbf16, #tpu.memory_space<vmem>>, vector<1x128x128xbf16>
    %93 = vector.shape_cast %92 : vector<1x128x128xbf16> to vector<128x128xbf16>
    %cst_68 = arith.constant dense<0.000000e+00> : vector<2x128xf32>
    %94 = tpu.matmul %91, %93, %cst_68 {dimension_numbers = #tpu.dot_dimension_numbers<[1], [0], [0], [1], [0, 0, 1, 1], [], []>} : vector<2x128xbf16>, vector<128x128xbf16>, vector<2x128xf32> -> vector<2x128xf32>
    %95 = arith.addf %90, %94 : vector<2x128xf32>
    %96 = vector.extract_strided_slice %24 {offsets = [28, 0], sizes = [2, 128], strides = [1, 1]} : vector<32x128xbf16> to vector<2x128xbf16>
    %c14 = arith.constant 14 : index
    %c0_69 = arith.constant 0 : index
    %c0_70 = arith.constant 0 : index
    %97 = vector.load %arg4[%c14, %c0_69, %c0_70] : memref<16x128x128xbf16, #tpu.memory_space<vmem>>, vector<1x128x128xbf16>
    %98 = vector.shape_cast %97 : vector<1x128x128xbf16> to vector<128x128xbf16>
    %cst_71 = arith.constant dense<0.000000e+00> : vector<2x128xf32>
    %99 = tpu.matmul %96, %98, %cst_71 {dimension_numbers = #tpu.dot_dimension_numbers<[1], [0], [0], [1], [0, 0, 1, 1], [], []>} : vector<2x128xbf16>, vector<128x128xbf16>, vector<2x128xf32> -> vector<2x128xf32>
    %100 = arith.addf %95, %99 : vector<2x128xf32>
    %101 = vector.extract_strided_slice %24 {offsets = [30, 0], sizes = [2, 128], strides = [1, 1]} : vector<32x128xbf16> to vector<2x128xbf16>
    %c15 = arith.constant 15 : index
    %c0_72 = arith.constant 0 : index
    %c0_73 = arith.constant 0 : index
    %102 = vector.load %arg4[%c15, %c0_72, %c0_73] : memref<16x128x128xbf16, #tpu.memory_space<vmem>>, vector<1x128x128xbf16>
    %103 = vector.shape_cast %102 : vector<1x128x128xbf16> to vector<128x128xbf16>
    %cst_74 = arith.constant dense<0.000000e+00> : vector<2x128xf32>
    %104 = tpu.matmul %101, %103, %cst_74 {dimension_numbers = #tpu.dot_dimension_numbers<[1], [0], [0], [1], [0, 0, 1, 1], [], []>} : vector<2x128xbf16>, vector<128x128xbf16>, vector<2x128xf32> -> vector<2x128xf32>
    %105 = arith.addf %100, %104 : vector<2x128xf32>
    %c0_75 = arith.constant 0 : index
    %c0_76 = arith.constant 0 : index
    %106 = vector.load %arg5[%c0_75, %c0_76] : memref<1x128xf32, #tpu.memory_space<vmem>>, vector<1x128xf32>
    %107 = vector.broadcast %106 : vector<1x128xf32> to vector<2x128xf32>
    %108 = arith.addf %105, %107 : vector<2x128xf32>
    %cst_77 = arith.constant 0.000000e+00 : f32
    %109 = vector.broadcast %cst_77 : f32 to vector<2x128xf32>
    %110 = arith.maximumf %108, %109 : vector<2x128xf32>
    %111 = arith.truncf %110 : vector<2x128xf32> to vector<2x128xbf16>
    %c0_78 = arith.constant 0 : index
    %c0_79 = arith.constant 0 : index
    %112 = vector.load %arg6[%c0_78, %c0_79] : memref<128x128xbf16, #tpu.memory_space<vmem>>, vector<128x128xbf16>
    %cst_80 = arith.constant dense<0.000000e+00> : vector<2x128xf32>
    %113 = tpu.matmul %111, %112, %cst_80 {dimension_numbers = #tpu.dot_dimension_numbers<[1], [0], [0], [1], [0, 0, 1, 1], [], []>} : vector<2x128xbf16>, vector<128x128xbf16>, vector<2x128xf32> -> vector<2x128xf32>
    %c0_81 = arith.constant 0 : index
    %c0_82 = arith.constant 0 : index
    %114 = vector.load %arg7[%c0_81, %c0_82] : memref<1x128xf32, #tpu.memory_space<vmem>>, vector<1x128xf32>
    %115 = vector.broadcast %114 : vector<1x128xf32> to vector<2x128xf32>
    %116 = arith.addf %113, %115 : vector<2x128xf32>
    %cst_83 = arith.constant 0.000000e+00 : f32
    %117 = vector.broadcast %cst_83 : f32 to vector<2x128xf32>
    %118 = arith.maximumf %116, %117 : vector<2x128xf32>
    %119 = arith.truncf %118 : vector<2x128xf32> to vector<2x128xbf16>
    %c0_84 = arith.constant 0 : index
    %c0_85 = arith.constant 0 : index
    %120 = vector.load %arg8[%c0_84, %c0_85] : memref<128x128xbf16, #tpu.memory_space<vmem>>, vector<128x128xbf16>
    %cst_86 = arith.constant dense<0.000000e+00> : vector<2x128xf32>
    %121 = tpu.matmul %119, %120, %cst_86 {dimension_numbers = #tpu.dot_dimension_numbers<[1], [0], [0], [1], [0, 0, 1, 1], [], []>} : vector<2x128xbf16>, vector<128x128xbf16>, vector<2x128xf32> -> vector<2x128xf32>
    %c0_87 = arith.constant 0 : index
    %c0_88 = arith.constant 0 : index
    %122 = vector.load %arg9[%c0_87, %c0_88] : memref<1x128xf32, #tpu.memory_space<vmem>>, vector<1x128xf32>
    %123 = vector.broadcast %122 : vector<1x128xf32> to vector<2x128xf32>
    %124 = arith.addf %121, %123 : vector<2x128xf32>
    %c0_89 = arith.constant 0 : index
    %c0_90 = arith.constant 0 : index
    %125 = vector.load %arg10[%c0_89, %c0_90] : memref<2x128xf32, #tpu.memory_space<vmem>>, vector<2x128xf32>
    tpu.vector_store %arg10[%c0_89, %c0_90], %124 {strides = array<i32>} : memref<2x128xf32, #tpu.memory_space<vmem>>, vector<2x128xf32>,
    return
  }
  func.func @transform_0(%arg0: i32) -> (i32, i32, i32) {
    %c0_i32 = arith.constant 0 : i32
    %c0_i32_0 = arith.constant 0 : i32
    %c0_i32_1 = arith.constant 0 : i32
    return %arg0, %c0_i32, %c0_i32_0 : i32, i32, i32
  }
  func.func @transform_1(%arg0: i32) -> (i32, i32) {
    %c0_i32 = arith.constant 0 : i32
    %c0_i32_0 = arith.constant 0 : i32
    %c0_i32_1 = arith.constant 0 : i32
    return %c0_i32, %c0_i32_0 : i32, i32
  }
  func.func @transform_2(%arg0: i32) -> (i32, i32) {
    %c0_i32 = arith.constant 0 : i32
    %c0_i32_0 = arith.constant 0 : i32
    %c0_i32_1 = arith.constant 0 : i32
    return %c0_i32, %c0_i32_0 : i32, i32
  }
  func.func @transform_3(%arg0: i32) -> (i32, i32, i32) {
    %c0_i32 = arith.constant 0 : i32
    %c0_i32_0 = arith.constant 0 : i32
    %c0_i32_1 = arith.constant 0 : i32
    %c0_i32_2 = arith.constant 0 : i32
    return %c0_i32, %c0_i32_0, %c0_i32_1 : i32, i32, i32
  }
  func.func @transform_4(%arg0: i32) -> (i32, i32) {
    %c0_i32 = arith.constant 0 : i32
    %c0_i32_0 = arith.constant 0 : i32
    %c0_i32_1 = arith.constant 0 : i32
    return %c0_i32, %c0_i32_0 : i32, i32
  }
  func.func @transform_5(%arg0: i32) -> (i32, i32) {
    %c0_i32 = arith.constant 0 : i32
    %c0_i32_0 = arith.constant 0 : i32
    %c0_i32_1 = arith.constant 0 : i32
    return %c0_i32, %c0_i32_0 : i32, i32
  }
  func.func @transform_6(%arg0: i32) -> (i32, i32) {
    %c0_i32 = arith.constant 0 : i32
    %c0_i32_0 = arith.constant 0 : i32
    %c0_i32_1 = arith.constant 0 : i32
    return %c0_i32, %c0_i32_0 : i32, i32
  }
  func.func @transform_7(%arg0: i32) -> (i32, i32) {
    %c0_i32 = arith.constant 0 : i32
    %c0_i32_0 = arith.constant 0 : i32
    %c0_i32_1 = arith.constant 0 : i32
    return %c0_i32, %c0_i32_0 : i32, i32
  }
  func.func @transform_8(%arg0: i32) -> (i32, i32) {
    %c0_i32 = arith.constant 0 : i32
    %c0_i32_0 = arith.constant 0 : i32
    %c0_i32_1 = arith.constant 0 : i32
    return %c0_i32, %c0_i32_0 : i32, i32
  }
  func.func @transform_9(%arg0: i32) -> (i32, i32) {
    %c0_i32 = arith.constant 0 : i32
    %c0_i32_0 = arith.constant 0 : i32
    return %arg0, %c0_i32 : i32, i32
  }
}

</mosaic_0001>

<bundles_post_ra>
// kernel: fashion_cnn_forward.2
= control target key start
LH: loop header
LB: loop body
LE: loop exit
PB: predicated region body
PF: predicated region fallthrough
CT: control target
= control target key end

     0   :  { %vm211_vm0 = vcmask 1043456   ;;  %vm212_vm1 = vcmask 1044480   ;;  %v2076_v2 = vmov 65535   ;;  %vm156_vm2 = vcmask 203776   ;;  %s2489_s1 = inlined_call_operand.vmem [shape: bf16[25,128], index: 1, kind: input, shape index: {}]   ;;  %s2490_s0 = inlined_call_operand.vmem [shape: bf16[4,288,25], index: 0, kind: input, shape index: {}]   ;;  %s2491_s2 = inlined_call_operand.vmem [shape: f32[1,128], index: 2, kind: input, shape index: {}]   ;;  %s2492_s3 = inlined_call_operand.vmem [shape: bf16[288,128], index: 3, kind: output, shape index: {}]  }
   0x1   :  { %v1495_v0 = vld [vmem:[%s2489_s1 + $0x8] sm:$0xf]  ;;  %v1912_v1 = vld [vmem:[%s2489_s1 + $0x8] sm:$0x10]  ;;  %v213_v3 = vsel %vm211_vm0, 4294967295, %v2076_v2  ;;  %v1911_v7 = vld [vmem:[%s2489_s1] sm:$0xff] }
   0x2   :  { %v1496_v4 = vor.u32 %v1912_v1, %v1495_v0  ;;  %v214_v5 = vsel %vm212_vm1, %v213_v3, 0  ;;  %v1893_v8 = vld [vmem:[%s2490_s0] sm:$0xff]  ;;  %v1913_v9 = vld [vmem:[%s2490_s0 + $0x90] sm:$0xff]  ;;  %v1894_v12 = vld [vmem:[%s2490_s0 + $0x8] sm:$0xff] }
   0x3   :  { %v1931_v10 = vld [vmem:[%s2490_s0 + $0x120] sm:$0xff]  ;;  %v1949_v11 = vld [vmem:[%s2490_s0 + $0x1b0] sm:$0xff]  ;;  %v1914_v13 = vld [vmem:[%s2490_s0 + $0x98] sm:$0xff] }
   0x4   :  { %v216_v6 = vand.u32 %v1496_v4, %v214_v5  ;;  %v1932_v14 = vld [vmem:[%s2490_s0 + $0x128] sm:$0xff]  ;;  %v1950_v15 = vld [vmem:[%s2490_s0 + $0x1b8] sm:$0xff]  ;;  %v1895_v16 = vld [vmem:[%s2490_s0 + $0x10] sm:$0xff] }
   0x5   :  { %v1915_v17 = vld [vmem:[%s2490_s0 + $0xa0] sm:$0xff]  ;;  %v1933_v18 = vld [vmem:[%s2490_s0 + $0x130] sm:$0xff]  ;;  %v1896_v20 = vld [vmem:[%s2490_s0 + $0x18] sm:$0xff] }
   0x6   :  { %224 = vmatpush.bf16.msra.mxu0 %v216_v6  ;;  %504 = vmatpush.bf16.msra.mxu1 %v216_v6  ;;  %v1951_v19 = vld [vmem:[%s2490_s0 + $0x1c0] sm:$0xff]  ;;  %v1916_v21 = vld [vmem:[%s2490_s0 + $0xa8] sm:$0xff]  ;;  %v1934_v22 = vld [vmem:[%s2490_s0 + $0x138] sm:$0xff] }
   0x7   :  { %820 = vmatpush.bf16.msra.mxu2 %v216_v6  ;;  %1136 = vmatpush.bf16.msra.mxu3 %v216_v6  ;;  %v1952_v23 = vld [vmem:[%s2490_s0 + $0x1c8] sm:$0xff]  ;;  %v1897_v24 = vld [vmem:[%s2490_s0 + $0x20] sm:$0xff]  ;;  %v1917_v25 = vld [vmem:[%s2490_s0 + $0xb0] sm:$0xff] }
   0x8   :  { %v1935_v26 = vld [vmem:[%s2490_s0 + $0x140] sm:$0xff]  ;;  %v1953_v27 = vld [vmem:[%s2490_s0 + $0x1d0] sm:$0xff]  ;;  %v1898_v28 = vld [vmem:[%s2490_s0 + $0x28] sm:$0xff] }
   0x9   :  { %v1918_v29 = vld [vmem:[%s2490_s0 + $0xb8] sm:$0xff]  ;;  %v1936_v30 = vld [vmem:[%s2490_s0 + $0x148] sm:$0xff]  ;;  %v1899_v32 = vld [vmem:[%s2490_s0 + $0x30] sm:$0xff] }
   0xa   :  { %225 = vmatpush.bf16.msra.mxu0 %v1911_v7  ;;  %505 = vmatpush.bf16.msra.mxu1 %v1911_v7  ;;  %v1954_v31 = vld [vmem:[%s2490_s0 + $0x1d8] sm:$0xff]  ;;  %v1919_v33 = vld [vmem:[%s2490_s0 + $0xc0] sm:$0xff]  ;;  %v1937_v34 = vld [vmem:[%s2490_s0 + $0x150] sm:$0xff] }
   0xb   :  { %821 = vmatpush.bf16.msra.mxu2 %v1911_v7  ;;  %1137 = vmatpush.bf16.msra.mxu3 %v1911_v7  ;;  %v1955_v35 = vld [vmem:[%s2490_s0 + $0x1e0] sm:$0xff]  ;;  %v1900_v36 = vld [vmem:[%s2490_s0 + $0x38] sm:$0xff]  ;;  %v1920_v37 = vld [vmem:[%s2490_s0 + $0xc8] sm:$0xff] }
   0xc   :  { %v1938_v38 = vld [vmem:[%s2490_s0 + $0x158] sm:$0xff]  ;;  %v1956_v39 = vld [vmem:[%s2490_s0 + $0x1e8] sm:$0xff]  ;;  %v1901_v40 = vld [vmem:[%s2490_s0 + $0x40] sm:$0xff] }
   0xd   :  { %1497 = vmatmul.msk.bf16.vlgmr.msra.gmra.mxu0 %vm156_vm2, %v1893_v8  ;;  %1623 = vmatmul.msk.bf16.vlgmr.msra.gmra.mxu1 %vm156_vm2, %v1913_v9  ;;  %v1921_v41 = vld [vmem:[%s2490_s0 + $0xd0] sm:$0xff]  ;;  %v1939_v44 = vld [vmem:[%s2490_s0 + $0x160] sm:$0xff]  ;;  %v1902_v57 = vld [vmem:[%s2490_s0 + $0x48] sm:$0xff] }
   0xe   :  { %1749 = vmatmul.msk.bf16.vlgmr.msra.gmra.mxu2 %vm156_vm2, %v1931_v10  ;;  %1875 = vmatmul.msk.bf16.vlgmr.msra.gmra.mxu3 %vm156_vm2, %v1949_v11  ;;  %v1957_v45 = vld [vmem:[%s2490_s0 + $0x1f0] sm:$0xff]  ;;  %v2253_v53 = vld [vmem:[%s2491_s2] ss:$0 sm:$0xff]  ;;  %v1922_v58 = vld [vmem:[%s2490_s0 + $0xd8] sm:$0xff] }
   0xf   :  { %v1940_v62 = vld [vmem:[%s2490_s0 + $0x168] sm:$0xff]  ;;  %v1958_v63 = vld [vmem:[%s2490_s0 + $0x1f8] sm:$0xff] }
  0x1d   :  { %1498 = vmatmul.msk.bf16.gmra.mxu0 %vm156_vm2, %v1894_v12  ;;  %1624 = vmatmul.msk.bf16.gmra.mxu1 %vm156_vm2, %v1914_v13 }
  0x1e   :  { %1750 = vmatmul.msk.bf16.gmra.mxu2 %vm156_vm2, %v1932_v14  ;;  %1876 = vmatmul.msk.bf16.gmra.mxu3 %vm156_vm2, %v1950_v15 }
  0x2d   :  { %1499 = vmatmul.msk.bf16.gmra.mxu0 %vm156_vm2, %v1895_v16  ;;  %1625 = vmatmul.msk.bf16.gmra.mxu1 %vm156_vm2, %v1915_v17  ;;  %v1903_v16 = vld [vmem:[%s2490_s0 + $0x50] sm:$0xff]  ;;  %v1923_v17 = vld [vmem:[%s2490_s0 + $0xe0] sm:$0xff] }
  0x2e   :  { %1751 = vmatmul.msk.bf16.gmra.mxu2 %vm156_vm2, %v1933_v18  ;;  %1877 = vmatmul.msk.bf16.gmra.mxu3 %vm156_vm2, %v1951_v19 }
  0x3d   :  { %1500 = vmatmul.msk.bf16.gmra.mxu0 %vm156_vm2, %v1896_v20  ;;  %1626 = vmatmul.msk.bf16.gmra.mxu1 %vm156_vm2, %v1916_v21  ;;  %v1941_v21 = vld [vmem:[%s2490_s0 + $0x170] sm:$0xff] }
  0x3e   :  { %1752 = vmatmul.msk.bf16.gmra.mxu2 %vm156_vm2, %v1934_v22  ;;  %1878 = vmatmul.msk.bf16.gmra.mxu3 %vm156_vm2, %v1952_v23  ;;  %v1959_v22 = vld [vmem:[%s2490_s0 + $0x200] sm:$0xff] }
  0x4d   :  { %1501 = vmatmul.msk.bf16.gmra.mxu0 %vm156_vm2, %v1897_v24  ;;  %1627 = vmatmul.msk.bf16.gmra.mxu1 %vm156_vm2, %v1917_v25 }
  0x4e   :  { %1753 = vmatmul.msk.bf16.gmra.mxu2 %vm156_vm2, %v1935_v26  ;;  %1879 = vmatmul.msk.bf16.gmra.mxu3 %vm156_vm2, %v1953_v27 }
  0x5d   :  { %1502 = vmatmul.msk.bf16.gmra.mxu0 %vm156_vm2, %v1898_v28  ;;  %1628 = vmatmul.msk.bf16.gmra.mxu1 %vm156_vm2, %v1918_v29 }
  0x5e   :  { %1754 = vmatmul.msk.bf16.gmra.mxu2 %vm156_vm2, %v1936_v30  ;;  %1880 = vmatmul.msk.bf16.gmra.mxu3 %vm156_vm2, %v1954_v31 }
  0x6d   :  { %1503 = vmatmul.msk.bf16.gmra.mxu0 %vm156_vm2, %v1899_v32  ;;  %1629 = vmatmul.msk.bf16.gmra.mxu1 %vm156_vm2, %v1919_v33 }
  0x6e   :  { %1755 = vmatmul.msk.bf16.gmra.mxu2 %vm156_vm2, %v1937_v34  ;;  %1881 = vmatmul.msk.bf16.gmra.mxu3 %vm156_vm2, %v1955_v35 }
  0x7d   :  { %1504 = vmatmul.msk.bf16.gmra.mxu0 %vm156_vm2, %v1900_v36  ;;  %1630 = vmatmul.msk.bf16.gmra.mxu1 %vm156_vm2, %v1920_v37 }
  0x7e   :  { %1756 = vmatmul.msk.bf16.gmra.mxu2 %vm156_vm2, %v1938_v38  ;;  %1882 = vmatmul.msk.bf16.gmra.mxu3 %vm156_vm2, %v1956_v39  ;;  %v1904_v39 = vld [vmem:[%s2490_s0 + $0x58] sm:$0xff] }
  0x8a   :  { %v227_v42 = vpop.f32.mrf.mxu0  ;;  %v507_v43 = vpop.f32.mrf.mxu1 }
  0x8b   :  { %v597_v46 = vmax.f32 %v227_v42, %v507_v43 }
  0x8d   :  { %1505 = vmatmul.msk.bf16.gmra.mxu0 %vm156_vm2, %v1901_v40  ;;  %1631 = vmatmul.msk.bf16.gmra.mxu1 %vm156_vm2, %v1921_v41  ;;  %v1924_v40 = vld [vmem:[%s2490_s0 + $0xe8] sm:$0xff] }
  0x8e   :  { %1757 = vmatmul.msk.bf16.gmra.mxu2 %vm156_vm2, %v1939_v44  ;;  %1883 = vmatmul.msk.bf16.gmra.mxu3 %vm156_vm2, %v1957_v45  ;;  %v1942_v44 = vld [vmem:[%s2490_s0 + $0x178] sm:$0xff]  ;;  %v1960_v45 = vld [vmem:[%s2490_s0 + $0x208] sm:$0xff] }
  0x91   :  { %v823_v47 = vpop.f32.mrf.mxu2  ;;  %v1139_v48 = vpop.f32.mrf.mxu3 }
  0x92   :  { %v229_v49 = vpop.f32.mrf.mxu0  ;;  %v509_v50 = vpop.f32.mrf.mxu1  ;;  %v913_v51 = vmax.f32 %v597_v46, %v823_v47 }
  0x93   :  { %v598_v54 = vmax.f32 %v229_v49, %v509_v50 }
  0x94   :  { %v1229_v52 = vmax.f32 %v913_v51, %v1139_v48 }
  0x96   :  { %v1269_v0 = vadd.f32 %v2253_v53, %v1229_v52 }
  0x98   :  { %v1305_v3 = vmax.f32 %v1269_v0, 0.0  ;;  %v1925_v0 = vld [vmem:[%s2490_s0 + $0xf0] sm:$0xff] }
  0x99   :  { %v825_v55 = vpop.f32.mrf.mxu2  ;;  %v1141_v56 = vpop.f32.mrf.mxu3 }
  0x9a   :  { %v914_v59 = vmax.f32 %v598_v54, %v825_v55  ;;  %v232_v60 = vpop.f32.mrf.mxu0  ;;  %v512_v61 = vpop.f32.mrf.mxu1 }
  0x9b   :  { %v599_v5 = vmax.f32 %v232_v60, %v512_v61 }
  0x9c   :  { %v1230_v1 = vmax.f32 %v914_v59, %v1141_v56 }
  0x9d   :  { %1506 = vmatmul.msk.bf16.gmra.mxu0 %vm156_vm2, %v1902_v57  ;;  %1632 = vmatmul.msk.bf16.gmra.mxu1 %vm156_vm2, %v1922_v58 }
  0x9e   :  { %v1270_v2 = vadd.f32 %v2253_v53, %v1230_v1  ;;  %1758 = vmatmul.msk.bf16.gmra.mxu2 %vm156_vm2, %v1940_v62  ;;  %1884 = vmatmul.msk.bf16.gmra.mxu3 %vm156_vm2, %v1958_v63  ;;  %v1905_v63 = vld [vmem:[%s2490_s0 + $0x60] sm:$0xff] }
  0xa0   :  { %v1306_v4 = vmax.f32 %v1270_v2, 0.0 }
  0xa1   :  { %v828_v6 = vpop.f32.mrf.mxu2  ;;  %v1144_v7 = vpop.f32.mrf.mxu3 }
  0xa2   :  { %v1970_v8 = vpack.c.bf16 %v1306_v4, %v1305_v3  ;;  %v234_v9 = vpop.f32.mrf.mxu0  ;;  %v514_v10 = vpop.f32.mrf.mxu1  ;;  %v915_v11 = vmax.f32 %v599_v5, %v828_v6  ;;  %v1943_v4 = vld [vmem:[%s2490_s0 + $0x180] sm:$0xff]  ;;  %v1961_v5 = vld [vmem:[%s2490_s0 + $0x210] sm:$0xff] }
  0xa3   :  { %v600_v13 = vmax.f32 %v234_v9, %v514_v10 }
  0xa4   :  { %1971 = vst [vmem:[%s2492_s3] sm:$0xff] %v1970_v8   ;;  %v1231_v12 = vmax.f32 %v915_v11, %v1144_v7 }
  0xa6   :  { %v1271_v23 = vadd.f32 %v2253_v53, %v1231_v12 }
  0xa8   :  { %v1307_v26 = vmax.f32 %v1271_v23, 0.0  ;;  %v1926_v23 = vld [vmem:[%s2490_s0 + $0xf8] sm:$0xff] }
  0xa9   :  { %v830_v14 = vpop.f32.mrf.mxu2  ;;  %v1146_v15 = vpop.f32.mrf.mxu3 }
  0xaa   :  { %v916_v18 = vmax.f32 %v600_v13, %v830_v14  ;;  %v237_v19 = vpop.f32.mrf.mxu0  ;;  %v517_v20 = vpop.f32.mrf.mxu1 }
  0xab   :  { %v601_v28 = vmax.f32 %v237_v19, %v517_v20 }
  0xac   :  { %v1232_v24 = vmax.f32 %v916_v18, %v1146_v15 }
  0xad   :  { %1507 = vmatmul.msk.bf16.gmra.mxu0 %vm156_vm2, %v1903_v16  ;;  %1633 = vmatmul.msk.bf16.gmra.mxu1 %vm156_vm2, %v1923_v17 }
  0xae   :  { %v1272_v25 = vadd.f32 %v2253_v53, %v1232_v24  ;;  %1759 = vmatmul.msk.bf16.gmra.mxu2 %vm156_vm2, %v1941_v21  ;;  %1885 = vmatmul.msk.bf16.gmra.mxu3 %vm156_vm2, %v1959_v22  ;;  %v1906_v22 = vld [vmem:[%s2490_s0 + $0x68] sm:$0xff] }
  0xb0   :  { %v1308_v27 = vmax.f32 %v1272_v25, 0.0 }
  0xb1   :  { %v833_v29 = vpop.f32.mrf.mxu2  ;;  %v1149_v30 = vpop.f32.mrf.mxu3 }
  0xb2   :  { %v1975_v31 = vpack.c.bf16 %v1308_v27, %v1307_v26  ;;  %v239_v32 = vpop.f32.mrf.mxu0  ;;  %v519_v33 = vpop.f32.mrf.mxu1  ;;  %v917_v34 = vmax.f32 %v601_v28, %v833_v29  ;;  %v1944_v27 = vld [vmem:[%s2490_s0 + $0x188] sm:$0xff]  ;;  %v1962_v28 = vld [vmem:[%s2490_s0 + $0x218] sm:$0xff] }
  0xb3   :  { %v602_v36 = vmax.f32 %v239_v32, %v519_v33 }
  0xb4   :  { %2057 = vst [vmem:[%s2492_s3 + $0x8] sm:$0xff] %v1975_v31   ;;  %v1233_v35 = vmax.f32 %v917_v34, %v1149_v30 }
  0xb6   :  { %v1273_v46 = vadd.f32 %v2253_v53, %v1233_v35 }
  0xb8   :  { %v1309_v49 = vmax.f32 %v1273_v46, 0.0  ;;  %v1927_v46 = vld [vmem:[%s2490_s0 + $0x100] sm:$0xff] }
  0xb9   :  { %v835_v37 = vpop.f32.mrf.mxu2  ;;  %v1151_v38 = vpop.f32.mrf.mxu3 }
  0xba   :  { %v918_v41 = vmax.f32 %v602_v36, %v835_v37  ;;  %v242_v42 = vpop.f32.mrf.mxu0  ;;  %v522_v43 = vpop.f32.mrf.mxu1 }
  0xbb   :  { %v603_v51 = vmax.f32 %v242_v42, %v522_v43 }
  0xbc   :  { %v1234_v47 = vmax.f32 %v918_v41, %v1151_v38 }
  0xbd   :  { %1508 = vmatmul.msk.bf16.gmra.mxu0 %vm156_vm2, %v1904_v39  ;;  %1634 = vmatmul.msk.bf16.gmra.mxu1 %vm156_vm2, %v1924_v40 }
  0xbe   :  { %v1274_v48 = vadd.f32 %v2253_v53, %v1234_v47  ;;  %1760 = vmatmul.msk.bf16.gmra.mxu2 %vm156_vm2, %v1942_v44  ;;  %1886 = vmatmul.msk.bf16.gmra.mxu3 %vm156_vm2, %v1960_v45  ;;  %v1907_v45 = vld [vmem:[%s2490_s0 + $0x70] sm:$0xff] }
  0xc0   :  { %v1310_v50 = vmax.f32 %v1274_v48, 0.0 }
  0xc1   :  { %v838_v52 = vpop.f32.mrf.mxu2  ;;  %v1154_v54 = vpop.f32.mrf.mxu3 }
  0xc2   :  { %v1980_v55 = vpack.c.bf16 %v1310_v50, %v1309_v49  ;;  %v244_v56 = vpop.f32.mrf.mxu0  ;;  %v524_v57 = vpop.f32.mrf.mxu1  ;;  %v919_v58 = vmax.f32 %v603_v51, %v838_v52  ;;  %v1945_v50 = vld [vmem:[%s2490_s0 + $0x190] sm:$0xff]  ;;  %v1963_v51 = vld [vmem:[%s2490_s0 + $0x220] sm:$0xff] }
  0xc3   :  { %v604_v60 = vmax.f32 %v244_v56, %v524_v57 }
  0xc4   :  { %2058 = vst [vmem:[%s2492_s3 + $0x10] sm:$0xff] %v1980_v55   ;;  %v1235_v59 = vmax.f32 %v919_v58, %v1154_v54 }
  0xc6   :  { %v1275_v6 = vadd.f32 %v2253_v53, %v1235_v59 }
  0xc8   :  { %v1311_v9 = vmax.f32 %v1275_v6, 0.0  ;;  %v1928_v6 = vld [vmem:[%s2490_s0 + $0x108] sm:$0xff] }
  0xc9   :  { %v840_v61 = vpop.f32.mrf.mxu2  ;;  %v1156_v62 = vpop.f32.mrf.mxu3 }
  0xca   :  { %v920_v1 = vmax.f32 %v604_v60, %v840_v61  ;;  %v247_v2 = vpop.f32.mrf.mxu0  ;;  %v527_v3 = vpop.f32.mrf.mxu1 }
  0xcb   :  { %v605_v11 = vmax.f32 %v247_v2, %v527_v3 }
  0xcc   :  { %v1236_v7 = vmax.f32 %v920_v1, %v1156_v62 }
  0xcd   :  { %1509 = vmatmul.msk.bf16.gmra.mxu0 %vm156_vm2, %v1905_v63  ;;  %1635 = vmatmul.msk.bf16.gmra.mxu1 %vm156_vm2, %v1925_v0 }
  0xce   :  { %v1276_v8 = vadd.f32 %v2253_v53, %v1236_v7  ;;  %1761 = vmatmul.msk.bf16.gmra.mxu2 %vm156_vm2, %v1943_v4  ;;  %1887 = vmatmul.msk.bf16.gmra.mxu3 %vm156_vm2, %v1961_v5  ;;  %v1908_v5 = vld [vmem:[%s2490_s0 + $0x78] sm:$0xff] }
  0xd0   :  { %v1312_v10 = vmax.f32 %v1276_v8, 0.0 }
  0xd1   :  { %v843_v12 = vpop.f32.mrf.mxu2  ;;  %v1159_v13 = vpop.f32.mrf.mxu3 }
  0xd2   :  { %v1985_v14 = vpack.c.bf16 %v1312_v10, %v1311_v9  ;;  %v249_v15 = vpop.f32.mrf.mxu0  ;;  %v529_v16 = vpop.f32.mrf.mxu1  ;;  %v921_v17 = vmax.f32 %v605_v11, %v843_v12  ;;  %v1946_v10 = vld [vmem:[%s2490_s0 + $0x198] sm:$0xff]  ;;  %v1964_v11 = vld [vmem:[%s2490_s0 + $0x228] sm:$0xff] }
  0xd3   :  { %v606_v19 = vmax.f32 %v249_v15, %v529_v16 }
  0xd4   :  { %2059 = vst [vmem:[%s2492_s3 + $0x18] sm:$0xff] %v1985_v14   ;;  %v1237_v18 = vmax.f32 %v921_v17, %v1159_v13 }
  0xd6   :  { %v1277_v29 = vadd.f32 %v2253_v53, %v1237_v18 }
  0xd8   :  { %v1313_v32 = vmax.f32 %v1277_v29, 0.0  ;;  %v1929_v29 = vld [vmem:[%s2490_s0 + $0x110] sm:$0xff] }
  0xd9   :  { %v845_v20 = vpop.f32.mrf.mxu2  ;;  %v1161_v21 = vpop.f32.mrf.mxu3 }
  0xda   :  { %v922_v24 = vmax.f32 %v606_v19, %v845_v20  ;;  %v252_v25 = vpop.f32.mrf.mxu0  ;;  %v532_v26 = vpop.f32.mrf.mxu1 }
  0xdb   :  { %v607_v34 = vmax.f32 %v252_v25, %v532_v26 }
  0xdc   :  { %v1238_v30 = vmax.f32 %v922_v24, %v1161_v21 }
  0xdd   :  { %1510 = vmatmul.msk.bf16.gmra.mxu0 %vm156_vm2, %v1906_v22  ;;  %1636 = vmatmul.msk.bf16.gmra.mxu1 %vm156_vm2, %v1926_v23 }
  0xde   :  { %v1278_v31 = vadd.f32 %v2253_v53, %v1238_v30  ;;  %1762 = vmatmul.msk.bf16.gmra.mxu2 %vm156_vm2, %v1944_v27  ;;  %1888 = vmatmul.msk.bf16.gmra.mxu3 %vm156_vm2, %v1962_v28  ;;  %v1909_v28 = vld [vmem:[%s2490_s0 + $0x80] sm:$0xff] }
  0xe0   :  { %v1314_v33 = vmax.f32 %v1278_v31, 0.0 }
  0xe1   :  { %v848_v35 = vpop.f32.mrf.mxu2  ;;  %v1164_v36 = vpop.f32.mrf.mxu3 }
  0xe2   :  { %v1990_v37 = vpack.c.bf16 %v1314_v33, %v1313_v32  ;;  %v254_v38 = vpop.f32.mrf.mxu0  ;;  %v534_v39 = vpop.f32.mrf.mxu1  ;;  %v923_v40 = vmax.f32 %v607_v34, %v848_v35  ;;  %v1947_v33 = vld [vmem:[%s2490_s0 + $0x1a0] sm:$0xff]  ;;  %v1965_v34 = vld [vmem:[%s2490_s0 + $0x230] sm:$0xff] }
  0xe3   :  { %v608_v42 = vmax.f32 %v254_v38, %v534_v39 }
  0xe4   :  { %2060 = vst [vmem:[%s2492_s3 + $0x20] sm:$0xff] %v1990_v37   ;;  %v1239_v41 = vmax.f32 %v923_v40, %v1164_v36 }
  0xe6   :  { %v1279_v52 = vadd.f32 %v2253_v53, %v1239_v41 }
  0xe8   :  { %v1315_v56 = vmax.f32 %v1279_v52, 0.0  ;;  %v1930_v52 = vld [vmem:[%s2490_s0 + $0x118] sm:$0xff] }
  0xe9   :  { %v850_v43 = vpop.f32.mrf.mxu2  ;;  %v1166_v44 = vpop.f32.mrf.mxu3 }
  0xea   :  { %v924_v47 = vmax.f32 %v608_v42, %v850_v43  ;;  %v257_v48 = vpop.f32.mrf.mxu0  ;;  %v537_v49 = vpop.f32.mrf.mxu1 }
  0xeb   :  { %v609_v58 = vmax.f32 %v257_v48, %v537_v49 }
  0xec   :  { %v1240_v54 = vmax.f32 %v924_v47, %v1166_v44 }
  0xed   :  { %1511 = vmatmul.msk.bf16.gmra.mxu0 %vm156_vm2, %v1907_v45  ;;  %1637 = vmatmul.msk.bf16.gmra.mxu1 %vm156_vm2, %v1927_v46 }
  0xee   :  { %v1280_v55 = vadd.f32 %v2253_v53, %v1240_v54  ;;  %1763 = vmatmul.msk.bf16.gmra.mxu2 %vm156_vm2, %v1945_v50  ;;  %1889 = vmatmul.msk.bf16.gmra.mxu3 %vm156_vm2, %v1963_v51  ;;  %v1910_v51 = vld [vmem:[%s2490_s0 + $0x88] sm:$0xff] }
  0xf0   :  { %v1316_v57 = vmax.f32 %v1280_v55, 0.0 }
  0xf1   :  { %v853_v59 = vpop.f32.mrf.mxu2  ;;  %v1169_v60 = vpop.f32.mrf.mxu3 }
  0xf2   :  { %v1995_v61 = vpack.c.bf16 %v1316_v57, %v1315_v56  ;;  %v259_v62 = vpop.f32.mrf.mxu0  ;;  %v539_v63 = vpop.f32.mrf.mxu1  ;;  %v925_v0 = vmax.f32 %v609_v58, %v853_v59  ;;  %v1948_v57 = vld [vmem:[%s2490_s0 + $0x1a8] sm:$0xff]  ;;  %v1966_v58 = vld [vmem:[%s2490_s0 + $0x238] sm:$0xff] }
  0xf3   :  { %v610_v2 = vmax.f32 %v259_v62, %v539_v63 }
  0xf4   :  { %2061 = vst [vmem:[%s2492_s3 + $0x28] sm:$0xff] %v1995_v61   ;;  %v1241_v1 = vmax.f32 %v925_v0, %v1169_v60 }
  0xf6   :  { %v1281_v12 = vadd.f32 %v2253_v53, %v1241_v1 }
  0xf8   :  { %v1317_v15 = vmax.f32 %v1281_v12, 0.0 }
  0xf9   :  { %v855_v3 = vpop.f32.mrf.mxu2  ;;  %v1171_v4 = vpop.f32.mrf.mxu3 }
  0xfa   :  { %v926_v7 = vmax.f32 %v610_v2, %v855_v3  ;;  %v262_v8 = vpop.f32.mrf.mxu0  ;;  %v542_v9 = vpop.f32.mrf.mxu1 }
  0xfb   :  { %v611_v17 = vmax.f32 %v262_v8, %v542_v9 }
  0xfc   :  { %v1242_v13 = vmax.f32 %v926_v7, %v1171_v4 }
  0xfd   :  { %1512 = vmatmul.msk.bf16.gmra.mxu0 %vm156_vm2, %v1908_v5  ;;  %1638 = vmatmul.msk.bf16.gmra.mxu1 %vm156_vm2, %v1928_v6 }
  0xfe   :  { %v1282_v14 = vadd.f32 %v2253_v53, %v1242_v13  ;;  %1764 = vmatmul.msk.bf16.gmra.mxu2 %vm156_vm2, %v1946_v10  ;;  %1890 = vmatmul.msk.bf16.gmra.mxu3 %vm156_vm2, %v1964_v11 }
 0x100   :  { %v1318_v16 = vmax.f32 %v1282_v14, 0.0 }
 0x101   :  { %v858_v18 = vpop.f32.mrf.mxu2  ;;  %v1174_v19 = vpop.f32.mrf.mxu3 }
 0x102   :  { %v2000_v20 = vpack.c.bf16 %v1318_v16, %v1317_v15  ;;  %v264_v21 = vpop.f32.mrf.mxu0  ;;  %v544_v22 = vpop.f32.mrf.mxu1  ;;  %v927_v23 = vmax.f32 %v611_v17, %v858_v18 }
 0x103   :  { %v612_v25 = vmax.f32 %v264_v21, %v544_v22 }
 0x104   :  { %2062 = vst [vmem:[%s2492_s3 + $0x30] sm:$0xff] %v2000_v20   ;;  %v1243_v24 = vmax.f32 %v927_v23, %v1174_v19 }
 0x106   :  { %v1283_v35 = vadd.f32 %v2253_v53, %v1243_v24 }
 0x108   :  { %v1319_v38 = vmax.f32 %v1283_v35, 0.0 }
 0x109   :  { %v860_v26 = vpop.f32.mrf.mxu2  ;;  %v1176_v27 = vpop.f32.mrf.mxu3 }
 0x10a   :  { %v928_v30 = vmax.f32 %v612_v25, %v860_v26  ;;  %v267_v31 = vpop.f32.mrf.mxu0  ;;  %v547_v32 = vpop.f32.mrf.mxu1 }
 0x10b   :  { %v613_v40 = vmax.f32 %v267_v31, %v547_v32 }
 0x10c   :  { %v1244_v36 = vmax.f32 %v928_v30, %v1176_v27 }
 0x10d   :  { %1513 = vmatmul.msk.bf16.gmra.mxu0 %vm156_vm2, %v1909_v28  ;;  %1639 = vmatmul.msk.bf16.gmra.mxu1 %vm156_vm2, %v1929_v29 }
 0x10e   :  { %v1284_v37 = vadd.f32 %v2253_v53, %v1244_v36  ;;  %1765 = vmatmul.msk.bf16.gmra.mxu2 %vm156_vm2, %v1947_v33  ;;  %1891 = vmatmul.msk.bf16.gmra.mxu3 %vm156_vm2, %v1965_v34 }
 0x110   :  { %v1320_v39 = vmax.f32 %v1284_v37, 0.0 }
 0x111   :  { %v863_v41 = vpop.f32.mrf.mxu2  ;;  %v1179_v42 = vpop.f32.mrf.mxu3 }
 0x112   :  { %v2005_v43 = vpack.c.bf16 %v1320_v39, %v1319_v38  ;;  %v269_v44 = vpop.f32.mrf.mxu0  ;;  %v549_v45 = vpop.f32.mrf.mxu1  ;;  %v929_v46 = vmax.f32 %v613_v40, %v863_v41 }
 0x113   :  { %v614_v48 = vmax.f32 %v269_v44, %v549_v45 }
 0x114   :  { %2063 = vst [vmem:[%s2492_s3 + $0x38] sm:$0xff] %v2005_v43   ;;  %v1245_v47 = vmax.f32 %v929_v46, %v1179_v42 }
 0x116   :  { %v1285_v59 = vadd.f32 %v2253_v53, %v1245_v47 }
 0x118   :  { %v1321_v62 = vmax.f32 %v1285_v59, 0.0 }
 0x119   :  { %v865_v49 = vpop.f32.mrf.mxu2  ;;  %v1181_v50 = vpop.f32.mrf.mxu3 }
 0x11a   :  { %v930_v54 = vmax.f32 %v614_v48, %v865_v49  ;;  %v272_v55 = vpop.f32.mrf.mxu0  ;;  %v552_v56 = vpop.f32.mrf.mxu1 }
 0x11b   :  { %v615_v0 = vmax.f32 %v272_v55, %v552_v56 }
 0x11c   :  { %v1246_v60 = vmax.f32 %v930_v54, %v1181_v50 }
 0x11d   :  { %1514 = vmatmul.msk.bf16.gmra.mxu0 %vm156_vm2, %v1910_v51  ;;  %1640 = vmatmul.msk.bf16.gmra.mxu1 %vm156_vm2, %v1930_v52 }
 0x11e   :  { %v1286_v61 = vadd.f32 %v2253_v53, %v1246_v60  ;;  %1766 = vmatmul.msk.bf16.gmra.mxu2 %vm156_vm2, %v1948_v57  ;;  %1892 = vmatmul.msk.bf16.gmra.mxu3 %vm156_vm2, %v1966_v58 }
 0x120   :  { %v1322_v63 = vmax.f32 %v1286_v61, 0.0 }
 0x121   :  { %v868_v1 = vpop.f32.mrf.mxu2  ;;  %v1184_v2 = vpop.f32.mrf.mxu3 }
 0x122   :  { %v2010_v3 = vpack.c.bf16 %v1322_v63, %v1321_v62  ;;  %v274_v4 = vpop.f32.mrf.mxu0  ;;  %v554_v5 = vpop.f32.mrf.mxu1  ;;  %v931_v6 = vmax.f32 %v615_v0, %v868_v1 }
 0x123   :  { %v616_v8 = vmax.f32 %v274_v4, %v554_v5 }
 0x124   :  { %2064 = vst [vmem:[%s2492_s3 + $0x40] sm:$0xff] %v2010_v3   ;;  %v1247_v7 = vmax.f32 %v931_v6, %v1184_v2 }
 0x126   :  { %v1287_v14 = vadd.f32 %v2253_v53, %v1247_v7 }
 0x128   :  { %v1323_v17 = vmax.f32 %v1287_v14, 0.0 }
 0x129   :  { %v870_v9 = vpop.f32.mrf.mxu2  ;;  %v1186_v10 = vpop.f32.mrf.mxu3 }
 0x12a   :  { %v932_v11 = vmax.f32 %v616_v8, %v870_v9  ;;  %v277_v12 = vpop.f32.mrf.mxu0  ;;  %v557_v13 = vpop.f32.mrf.mxu1 }
 0x12b   :  { %v617_v19 = vmax.f32 %v277_v12, %v557_v13 }
 0x12c   :  { %v1248_v15 = vmax.f32 %v932_v11, %v1186_v10 }
 0x12e   :  { %v1288_v16 = vadd.f32 %v2253_v53, %v1248_v15 }
 0x130   :  { %v1324_v18 = vmax.f32 %v1288_v16, 0.0 }
 0x131   :  { %v873_v20 = vpop.f32.mrf.mxu2  ;;  %v1189_v21 = vpop.f32.mrf.mxu3 }
 0x132   :  { %v2015_v22 = vpack.c.bf16 %v1324_v18, %v1323_v17  ;;  %v279_v23 = vpop.f32.mrf.mxu0  ;;  %v559_v24 = vpop.f32.mrf.mxu1  ;;  %v933_v25 = vmax.f32 %v617_v19, %v873_v20 }
 0x133   :  { %v618_v27 = vmax.f32 %v279_v23, %v559_v24 }
 0x134   :  { %2065 = vst [vmem:[%s2492_s3 + $0x48] sm:$0xff] %v2015_v22   ;;  %v1249_v26 = vmax.f32 %v933_v25, %v1189_v21 }
 0x136   :  { %v1289_v33 = vadd.f32 %v2253_v53, %v1249_v26 }
 0x138   :  { %v1325_v36 = vmax.f32 %v1289_v33, 0.0 }
 0x139   :  { %v875_v28 = vpop.f32.mrf.mxu2  ;;  %v1191_v29 = vpop.f32.mrf.mxu3 }
 0x13a   :  { %v934_v30 = vmax.f32 %v618_v27, %v875_v28  ;;  %v282_v31 = vpop.f32.mrf.mxu0  ;;  %v562_v32 = vpop.f32.mrf.mxu1 }
 0x13b   :  { %v619_v38 = vmax.f32 %v282_v31, %v562_v32 }
 0x13c   :  { %v1250_v34 = vmax.f32 %v934_v30, %v1191_v29 }
 0x13e   :  { %v1290_v35 = vadd.f32 %v2253_v53, %v1250_v34 }
 0x140   :  { %v1326_v37 = vmax.f32 %v1290_v35, 0.0 }
 0x141   :  { %v878_v39 = vpop.f32.mrf.mxu2  ;;  %v1194_v40 = vpop.f32.mrf.mxu3 }
 0x142   :  { %v2020_v41 = vpack.c.bf16 %v1326_v37, %v1325_v36  ;;  %v284_v42 = vpop.f32.mrf.mxu0  ;;  %v564_v43 = vpop.f32.mrf.mxu1  ;;  %v935_v44 = vmax.f32 %v619_v38, %v878_v39 }
 0x143   :  { %v620_v46 = vmax.f32 %v284_v42, %v564_v43 }
 0x144   :  { %2066 = vst [vmem:[%s2492_s3 + $0x50] sm:$0xff] %v2020_v41   ;;  %v1251_v45 = vmax.f32 %v935_v44, %v1194_v40 }
 0x146   :  { %v1291_v52 = vadd.f32 %v2253_v53, %v1251_v45 }
 0x148   :  { %v1327_v56 = vmax.f32 %v1291_v52, 0.0 }
 0x149   :  { %v880_v47 = vpop.f32.mrf.mxu2  ;;  %v1196_v48 = vpop.f32.mrf.mxu3 }
 0x14a   :  { %v936_v49 = vmax.f32 %v620_v46, %v880_v47  ;;  %v287_v50 = vpop.f32.mrf.mxu0  ;;  %v567_v51 = vpop.f32.mrf.mxu1 }
 0x14b   :  { %v621_v58 = vmax.f32 %v287_v50, %v567_v51 }
 0x14c   :  { %v1252_v54 = vmax.f32 %v936_v49, %v1196_v48 }
 0x14e   :  { %v1292_v55 = vadd.f32 %v2253_v53, %v1252_v54 }
 0x150   :  { %v1328_v57 = vmax.f32 %v1292_v55, 0.0 }
 0x151   :  { %v883_v59 = vpop.f32.mrf.mxu2  ;;  %v1199_v60 = vpop.f32.mrf.mxu3 }
 0x152   :  { %v2025_v61 = vpack.c.bf16 %v1328_v57, %v1327_v56  ;;  %v289_v62 = vpop.f32.mrf.mxu0  ;;  %v569_v63 = vpop.f32.mrf.mxu1  ;;  %v937_v0 = vmax.f32 %v621_v58, %v883_v59 }
 0x153   :  { %v622_v2 = vmax.f32 %v289_v62, %v569_v63 }
 0x154   :  { %2067 = vst [vmem:[%s2492_s3 + $0x58] sm:$0xff] %v2025_v61   ;;  %v1253_v1 = vmax.f32 %v937_v0, %v1199_v60 }
 0x156   :  { %v1293_v8 = vadd.f32 %v2253_v53, %v1253_v1 }
 0x158   :  { %v1329_v11 = vmax.f32 %v1293_v8, 0.0 }
 0x159   :  { %v885_v3 = vpop.f32.mrf.mxu2  ;;  %v1201_v4 = vpop.f32.mrf.mxu3 }
 0x15a   :  { %v938_v5 = vmax.f32 %v622_v2, %v885_v3  ;;  %v292_v6 = vpop.f32.mrf.mxu0  ;;  %v572_v7 = vpop.f32.mrf.mxu1 }
 0x15b   :  { %v623_v13 = vmax.f32 %v292_v6, %v572_v7 }
 0x15c   :  { %v1254_v9 = vmax.f32 %v938_v5, %v1201_v4 }
 0x15e   :  { %v1294_v10 = vadd.f32 %v2253_v53, %v1254_v9 }
 0x160   :  { %v1330_v12 = vmax.f32 %v1294_v10, 0.0 }
 0x161   :  { %v888_v14 = vpop.f32.mrf.mxu2  ;;  %v1204_v15 = vpop.f32.mrf.mxu3 }
 0x162   :  { %v2030_v16 = vpack.c.bf16 %v1330_v12, %v1329_v11  ;;  %v294_v17 = vpop.f32.mrf.mxu0  ;;  %v574_v18 = vpop.f32.mrf.mxu1  ;;  %v939_v19 = vmax.f32 %v623_v13, %v888_v14 }
 0x163   :  { %v624_v21 = vmax.f32 %v294_v17, %v574_v18 }
 0x164   :  { %2068 = vst [vmem:[%s2492_s3 + $0x60] sm:$0xff] %v2030_v16   ;;  %v1255_v20 = vmax.f32 %v939_v19, %v1204_v15 }
 0x166   :  { %v1295_v27 = vadd.f32 %v2253_v53, %v1255_v20 }
 0x168   :  { %v1331_v30 = vmax.f32 %v1295_v27, 0.0 }
 0x169   :  { %v890_v22 = vpop.f32.mrf.mxu2  ;;  %v1206_v23 = vpop.f32.mrf.mxu3 }
 0x16a   :  { %v940_v24 = vmax.f32 %v624_v21, %v890_v22  ;;  %v297_v25 = vpop.f32.mrf.mxu0  ;;  %v577_v26 = vpop.f32.mrf.mxu1 }
 0x16b   :  { %v625_v32 = vmax.f32 %v297_v25, %v577_v26 }
 0x16c   :  { %v1256_v28 = vmax.f32 %v940_v24, %v1206_v23 }
 0x16e   :  { %v1296_v29 = vadd.f32 %v2253_v53, %v1256_v28 }
 0x170   :  { %v1332_v31 = vmax.f32 %v1296_v29, 0.0 }
 0x171   :  { %v893_v33 = vpop.f32.mrf.mxu2  ;;  %v1209_v34 = vpop.f32.mrf.mxu3 }
 0x172   :  { %v2035_v35 = vpack.c.bf16 %v1332_v31, %v1331_v30  ;;  %v299_v36 = vpop.f32.mrf.mxu0  ;;  %v579_v37 = vpop.f32.mrf.mxu1  ;;  %v941_v38 = vmax.f32 %v625_v32, %v893_v33 }
 0x173   :  { %v626_v40 = vmax.f32 %v299_v36, %v579_v37 }
 0x174   :  { %2069 = vst [vmem:[%s2492_s3 + $0x68] sm:$0xff] %v2035_v35   ;;  %v1257_v39 = vmax.f32 %v941_v38, %v1209_v34 }
 0x176   :  { %v1297_v46 = vadd.f32 %v2253_v53, %v1257_v39 }
 0x178   :  { %v1333_v49 = vmax.f32 %v1297_v46, 0.0 }
 0x179   :  { %v895_v41 = vpop.f32.mrf.mxu2  ;;  %v1211_v42 = vpop.f32.mrf.mxu3 }
 0x17a   :  { %v942_v43 = vmax.f32 %v626_v40, %v895_v41  ;;  %v302_v44 = vpop.f32.mrf.mxu0  ;;  %v582_v45 = vpop.f32.mrf.mxu1 }
 0x17b   :  { %v627_v51 = vmax.f32 %v302_v44, %v582_v45 }
 0x17c   :  { %v1258_v47 = vmax.f32 %v942_v43, %v1211_v42 }
 0x17e   :  { %v1298_v48 = vadd.f32 %v2253_v53, %v1258_v47 }
 0x180   :  { %v1334_v50 = vmax.f32 %v1298_v48, 0.0 }
 0x181   :  { %v898_v52 = vpop.f32.mrf.mxu2  ;;  %v1214_v54 = vpop.f32.mrf.mxu3 }
 0x182   :  { %v2040_v55 = vpack.c.bf16 %v1334_v50, %v1333_v49  ;;  %v304_v56 = vpop.f32.mrf.mxu0  ;;  %v584_v57 = vpop.f32.mrf.mxu1  ;;  %v943_v58 = vmax.f32 %v627_v51, %v898_v52 }
 0x183   :  { %v628_v60 = vmax.f32 %v304_v56, %v584_v57 }
 0x184   :  { %2070 = vst [vmem:[%s2492_s3 + $0x70] sm:$0xff] %v2040_v55   ;;  %v1259_v59 = vmax.f32 %v943_v58, %v1214_v54 }
 0x186   :  { %v1299_v2 = vadd.f32 %v2253_v53, %v1259_v59 }
 0x188   :  { %v1335_v5 = vmax.f32 %v1299_v2, 0.0 }
 0x189   :  { %v900_v61 = vpop.f32.mrf.mxu2  ;;  %v1216_v62 = vpop.f32.mrf.mxu3 }
 0x18a   :  { %v944_v63 = vmax.f32 %v628_v60, %v900_v61  ;;  %v307_v0 = vpop.f32.mrf.mxu0  ;;  %v587_v1 = vpop.f32.mrf.mxu1 }
 0x18b   :  { %v629_v7 = vmax.f32 %v307_v0, %v587_v1 }
 0x18c   :  { %v1260_v3 = vmax.f32 %v944_v63, %v1216_v62 }
 0x18e   :  { %v1300_v4 = vadd.f32 %v2253_v53, %v1260_v3 }
 0x190   :  { %v1336_v6 = vmax.f32 %v1300_v4, 0.0 }
 0x191   :  { %v903_v8 = vpop.f32.mrf.mxu2  ;;  %v1219_v9 = vpop.f32.mrf.mxu3 }
 0x192   :  { %v2045_v10 = vpack.c.bf16 %v1336_v6, %v1335_v5  ;;  %v309_v11 = vpop.f32.mrf.mxu0  ;;  %v589_v12 = vpop.f32.mrf.mxu1  ;;  %v945_v13 = vmax.f32 %v629_v7, %v903_v8 }
 0x193   :  { %v630_v15 = vmax.f32 %v309_v11, %v589_v12 }
 0x194   :  { %2071 = vst [vmem:[%s2492_s3 + $0x78] sm:$0xff] %v2045_v10   ;;  %v1261_v14 = vmax.f32 %v945_v13, %v1219_v9 }
 0x196   :  { %v1301_v21 = vadd.f32 %v2253_v53, %v1261_v14 }
 0x198   :  { %v1337_v24 = vmax.f32 %v1301_v21, 0.0 }
 0x199   :  { %v905_v16 = vpop.f32.mrf.mxu2  ;;  %v1221_v17 = vpop.f32.mrf.mxu3 }
 0x19a   :  { %v946_v18 = vmax.f32 %v630_v15, %v905_v16  ;;  %v312_v19 = vpop.f32.mrf.mxu0  ;;  %v592_v20 = vpop.f32.mrf.mxu1 }
 0x19b   :  { %v631_v26 = vmax.f32 %v312_v19, %v592_v20 }
 0x19c   :  { %v1262_v22 = vmax.f32 %v946_v18, %v1221_v17 }
 0x19e   :  { %v1302_v23 = vadd.f32 %v2253_v53, %v1262_v22 }
 0x1a0   :  { %v1338_v25 = vmax.f32 %v1302_v23, 0.0 }
 0x1a1   :  { %v908_v27 = vpop.f32.mrf.mxu2  ;;  %v1224_v28 = vpop.f32.mrf.mxu3 }
 0x1a2   :  { %v2050_v29 = vpack.c.bf16 %v1338_v25, %v1337_v24  ;;  %v947_v30 = vmax.f32 %v631_v26, %v908_v27  ;;  %v314_v31 = vpop.f32.mrf.mxu0  ;;  %v594_v32 = vpop.f32.mrf.mxu1 }
 0x1a3   :  { %v632_v34 = vmax.f32 %v314_v31, %v594_v32 }
 0x1a4   :  { %2072 = vst [vmem:[%s2492_s3 + $0x80] sm:$0xff] %v2050_v29   ;;  %v1263_v33 = vmax.f32 %v947_v30, %v1224_v28 }
 0x1a6   :  { %v1303_v38 = vadd.f32 %v2253_v53, %v1263_v33 }
 0x1a8   :  { %v1339_v41 = vmax.f32 %v1303_v38, 0.0 }
 0x1a9   :  { %v910_v35 = vpop.f32.mrf.mxu2  ;;  %v1226_v37 = vpop.f32.mrf.mxu3 }
 0x1aa   :  { %v948_v36 = vmax.f32 %v632_v34, %v910_v35 }
 0x1ac   :  { %v1264_v39 = vmax.f32 %v948_v36, %v1226_v37 }
 0x1ae   :  { %v1304_v40 = vadd.f32 %v2253_v53, %v1264_v39 }
 0x1b0   :  { %v1340_v42 = vmax.f32 %v1304_v40, 0.0 }
 0x1b2   :  { %v2055_v43 = vpack.c.bf16 %v1340_v42, %v1339_v41 }
 0x1b4   :  { %2073 = vst [vmem:[%s2492_s3 + $0x88] sm:$0xff] %v2055_v43  }

// kernel: fashion_cnn_forward.3
= control target key start
LH: loop header
LB: loop body
LE: loop exit
PB: predicated region body
PF: predicated region fallthrough
CT: control target
= control target key end

     0   :  { %vm139_vm0 = vcmask 1042432   ;;  %s3718_s0 = inlined_call_operand.vmem [shape: bf16[4,32,150], index: 0, kind: input, shape index: {}]   ;;  %s3719_s1 = inlined_call_operand.vmem [shape: bf16[150,128], index: 1, kind: input, shape index: {}]   ;;  %s3720_s2 = inlined_call_operand.vmem [shape: f32[1,128], index: 2, kind: input, shape index: {}]   ;;  %s3721_s3 = inlined_call_operand.vmem [shape: bf16[16,128,128], index: 3, kind: input, shape index: {}]   ;;  %s3722_s4 = inlined_call_operand.vmem [shape: f32[1,128], index: 4, kind: input, shape index: {}]   ;;  %s3723_s5 = inlined_call_operand.vmem [shape: bf16[128,128], index: 5, kind: input, shape index: {}]   ;;  %s3724_s6 = inlined_call_operand.vmem [shape: f32[1,128], index: 6, kind: input, shape index: {}]   ;;  %s3725_s7 = inlined_call_operand.vmem [shape: bf16[128,128], index: 7, kind: input, shape index: {}]   ;;  %s3726_s8 = inlined_call_operand.vmem [shape: f32[1,128], index: 8, kind: input, shape index: {}]   ;;  %s3727_s9 = inlined_call_operand.hbm [shape: f32[2,128], index: 9, kind: output, shape index: {}]  }
   0x1   :  { %v3085_v0 = vld [vmem:[%s3719_s1 + $0x38] sm:$0xff]  ;;  %v56_v1 = vld [vmem:[%s3719_s1 + $0x48] sm:$0x7]  ;;  %v3095_v3 = vld [vmem:[%s3719_s1 + $0x30] sm:$0xff] }
   0x2   :  { %v112_v2 = vunpack.c.l.b16 %v56_v1  ;;  %143 = vmatpush.bf16.msra.mxu0 %v3085_v0  ;;  %210 = vmatpush.bf16.msra.mxu2 %v3085_v0  ;;  %v2843_v6 = vld [vmem:[%s3719_s1 + $0x40] sm:$0xff]  ;;  %v2840_v7 = vld [vmem:[%s3719_s1 + $0x28] sm:$0xff] }
   0x3   :  { %v2844_v8 = vld [vmem:[%s3718_s0 + $0x24] sm:$0xf]  ;;  %v1957_v9 = vld [vmem:[%s3718_s0 + $0x28] sm:$0xf0] }
   0x4   :  { %v122_v4 = vpack.c.b16 %v112_v2, %v112_v2  ;;  %v2831_v10 = vld [vmem:[%s3718_s0 + $0x4] sm:$0xf]  ;;  %v1899_v11 = vld [vmem:[%s3718_s0 + $0x8] sm:$0xf0]  ;;  %v1960_v12 = vor.u32 %v2844_v8, %v1957_v9 }
   0x6   :  { %v141_v5 = vsel %vm139_vm0, %v122_v4, 0  ;;  %144 = vmatpush.bf16.msra.mxu0 %v3095_v3  ;;  %211 = vmatpush.bf16.msra.mxu2 %v3095_v3 }
   0x7   :  { %235 = vmatpush.bf16.msra.mxu3 %v141_v5  ;;  %168 = vmatpush.bf16.msra.mxu1 %v141_v5 }
   0x8   :  { %14 = vsyncpa [#allocation3], 0  ;;  %vm132_vm1 = vcmask 179200   ;;  %v2839_v13 = vld [vmem:[%s3719_s1 + $0x20] sm:$0xff]  ;;  %v1902_v14 = vor.u32 %v2831_v10, %v1899_v11  ;;  %v2838_v15 = vld [vmem:[%s3719_s1 + $0x18] sm:$0xff]  ;;  %s3031_s14 = smov [#allocation2]  }
   0x9   :  { %v2837_v16 = vld [vmem:[%s3719_s1 + $0x10] sm:$0xff]  ;;  %v2836_v17 = vld [vmem:[%s3719_s1 + $0x8] sm:$0xff]  ;;  %v1965_v19 = vld [vmem:[%s3718_s0 + $0x38] sm:$0xf0]  ;;  %s1884_s15 = sshll.u32 %s3031_s14, 4  ;;  %s1885_s15 = int_to_ptr.vmem [resolvable:$true] %s1884_s15 }
   0xa   :  { %145 = vmatpush.bf16.msra.mxu0 %v2840_v7  ;;  %212 = vmatpush.bf16.msra.mxu2 %v2840_v7  ;;  %v2846_v18 = vld [vmem:[%s3718_s0 + $0x34] sm:$0xf]  ;;  %v1907_v21 = vld [vmem:[%s3718_s0 + $0x18] sm:$0xf0]  ;;  %v2835_v23 = vld [vmem:[%s3719_s1] sm:$0xff] }
   0xb   :  { %236 = vmatpush.bf16.msra.mxu3 %v2843_v6  ;;  %169 = vmatpush.bf16.msra.mxu1 %v2843_v6  ;;  %v2833_v20 = vld [vmem:[%s3718_s0 + $0x14] sm:$0xf]  ;;  %v1968_v22 = vor.u32 %v2846_v18, %v1965_v19  ;;  %v1897_v24 = vld [vmem:[%s3718_s0] sm:$0xf]  ;;  %v2832_v25 = vld [vmem:[%s3718_s0 + $0x4] sm:$0xf0] }
   0xc   :  { %v1910_v26 = vor.u32 %v2833_v20, %v1907_v21  ;;  %v1955_v27 = vld [vmem:[%s3718_s0 + $0x20] sm:$0xf]  ;;  %v2845_v28 = vld [vmem:[%s3718_s0 + $0x24] sm:$0xf0]  ;;  %v1898_v29 = vor.u32 %v2832_v25, %v1897_v24  ;;  %v2848_v31 = vld [vmem:[%s3718_s0 + $0x44] sm:$0xf] }
   0xd   :  { %v1956_v30 = vor.u32 %v2845_v28, %v1955_v27  ;;  %v1979_v32 = vld [vmem:[%s3718_s0 + $0x48] sm:$0xf0]  ;;  %v1977_v33 = vld [vmem:[%s3718_s0 + $0x40] sm:$0xf]  ;;  %v2849_v34 = vld [vmem:[%s3718_s0 + $0x44] sm:$0xf0] }
   0xe   :  { %1969 = vmatmul.msk.bf16.vlgmr.msra.gmra.mxu3 %vm132_vm1, %v1960_v12  ;;  %146 = vmatpush.bf16.msra.mxu0 %v2839_v13  ;;  %v1982_v35 = vor.u32 %v2848_v31, %v1979_v32  ;;  %v1905_v36 = vld [vmem:[%s3718_s0 + $0x10] sm:$0xf]  ;;  %v2834_v37 = vld [vmem:[%s3718_s0 + $0x14] sm:$0xf0]  ;;  %v1978_v38 = vor.u32 %v2849_v34, %v1977_v33  ;;  %v2850_v43 = vld [vmem:[%s3718_s0 + $0x54] sm:$0xf] }
   0xf   :  { %281 = vmatpush.bf16.msrb.mxu1 %v3085_v0  ;;  %306 = vmatpush.bf16.msrb.mxu3 %v141_v5  ;;  %v1963_v39 = vld [vmem:[%s3718_s0 + $0x30] sm:$0xf]  ;;  %v2847_v40 = vld [vmem:[%s3718_s0 + $0x34] sm:$0xf0]  ;;  %v1906_v41 = vor.u32 %v2834_v37, %v1905_v36  ;;  %v1987_v44 = vld [vmem:[%s3718_s0 + $0x58] sm:$0xf0] }
  0x10   :  { %1947 = vmatmul.msk.bf16.vlgmr.msra.gmra.mxu1 %vm132_vm1, %v1902_v14  ;;  %213 = vmatpush.bf16.msra.mxu2 %v2839_v13  ;;  %v1964_v42 = vor.u32 %v2847_v40, %v1963_v39  ;;  %v1985_v45 = vld [vmem:[%s3718_s0 + $0x50] sm:$0xf]  ;;  %v2851_v46 = vld [vmem:[%s3718_s0 + $0x54] sm:$0xf0]  ;;  %v1990_v47 = vor.u32 %v2850_v43, %v1987_v44  ;;  %v1999_v48 = vld [vmem:[%s3718_s0 + $0x60] sm:$0xf] }
  0x11   :  { %v2853_v49 = vld [vmem:[%s3718_s0 + $0x64] sm:$0xf0]  ;;  %v1986_v50 = vor.u32 %v2851_v46, %v1985_v45  ;;  %v2852_v51 = vld [vmem:[%s3718_s0 + $0x64] sm:$0xf]  ;;  %v2001_v52 = vld [vmem:[%s3718_s0 + $0x68] sm:$0xf0] }
  0x12   :  { %147 = vmatpush.bf16.msra.mxu0 %v2838_v15  ;;  %v2000_v53 = vor.u32 %v2853_v49, %v1999_v48  ;;  %v2004_v54 = vor.u32 %v2852_v51, %v2001_v52  ;;  %v2007_v55 = vld [vmem:[%s3718_s0 + $0x70] sm:$0xf]  ;;  %v2855_v56 = vld [vmem:[%s3718_s0 + $0x74] sm:$0xf0]  ;;  %v2854_v57 = vld [vmem:[%s3718_s0 + $0x74] sm:$0xf] }
  0x13   :  { %282 = vmatpush.bf16.msrb.mxu1 %v3095_v3  ;;  %307 = vmatpush.bf16.msrb.mxu3 %v2843_v6  ;;  %v2009_v58 = vld [vmem:[%s3718_s0 + $0x78] sm:$0xf0]  ;;  %v2008_v59 = vor.u32 %v2855_v56, %v2007_v55  ;;  %v2862_v62 = vld [vmem:[%s3721_s3 + $0x30] sm:$0xff]  ;;  %v2861_v2 = vld [vmem:[%s3721_s3 + $0x28] sm:$0xff] }
  0x14   :  { %214 = vmatpush.bf16.msra.mxu2 %v2838_v15  ;;  %v2012_v60 = vor.u32 %v2854_v57, %v2009_v58  ;;  %v2863_v61 = vld [vmem:[%s3721_s3 + $0x38] sm:$0xff]  ;;  %v2878_v4 = vld [vmem:[%s3721_s3 + $0xb0] sm:$0xff]  ;;  %v2877_v8 = vld [vmem:[%s3721_s3 + $0xa8] sm:$0xff] }
  0x15   :  { %v2871_v63 = vld [vmem:[%s3721_s3 + $0x78] sm:$0xff]  ;;  %v2885_v9 = vld [vmem:[%s3721_s3 + $0xe8] sm:$0xff]  ;;  %v2868_v11 = vld [vmem:[%s3721_s3 + $0x60] sm:$0xff] }
  0x16   :  { %148 = vmatpush.bf16.msra.mxu0 %v2837_v16  ;;  %v2887_v1 = vld [vmem:[%s3721_s3 + $0xf8] sm:$0xff]  ;;  %v2876_v12 = vld [vmem:[%s3721_s3 + $0xa0] sm:$0xff]  ;;  %v2858_v14 = vld [vmem:[%s3721_s3 + $0x10] sm:$0xff] }
  0x17   :  { %283 = vmatpush.bf16.msrb.mxu1 %v2840_v7  ;;  %557 = vmatpush.bf16.msra.mxu3 %v2863_v61  ;;  %v2859_v10 = vld [vmem:[%s3721_s3 + $0x18] sm:$0xff]  ;;  %v2857_v18 = vld [vmem:[%s3721_s3 + $0x8] sm:$0xff]  ;;  %v2866_v19 = vld [vmem:[%s3721_s3 + $0x50] sm:$0xff] }
  0x18   :  { %215 = vmatpush.bf16.msra.mxu2 %v2837_v16  ;;  %v2874_v20 = vld [vmem:[%s3721_s3 + $0x90] sm:$0xff]  ;;  %v2865_v25 = vld [vmem:[%s3721_s3 + $0x48] sm:$0xff]  ;;  %v2872_v31 = vld [vmem:[%s3721_s3 + $0x80] sm:$0xff] }
  0x19   :  { %v2882_v21 = vld [vmem:[%s3721_s3 + $0xd0] sm:$0xff]  ;;  %v2881_v27 = vld [vmem:[%s3721_s3 + $0xc8] sm:$0xff]  ;;  %v2880_v32 = vld [vmem:[%s3721_s3 + $0xc0] sm:$0xff] }
  0x1a   :  { %149 = vmatpush.bf16.msra.mxu0 %v2836_v17  ;;  %v2895_v33 = vld [vmem:[%s3721_s3 + $0x138] sm:$0xff]  ;;  %v2901_v36 = vld [vmem:[%s3721_s3 + $0x168] sm:$0xff]  ;;  %v2894_v37 = vld [vmem:[%s3721_s3 + $0x130] sm:$0xff] }
  0x1b   :  { %284 = vmatpush.bf16.msrb.mxu1 %v2839_v13  ;;  %558 = vmatpush.bf16.msra.mxu3 %v2862_v62  ;;  %v2911_v34 = vld [vmem:[%s3721_s3 + $0x1b8] sm:$0xff]  ;;  %v2918_v39 = vld [vmem:[%s3721_s3 + $0x1f0] sm:$0xff]  ;;  %v2893_v44 = vld [vmem:[%s3721_s3 + $0x128] sm:$0xff] }
  0x1c   :  { %216 = vmatpush.bf16.msra.mxu2 %v2836_v17  ;;  %v2909_v45 = vld [vmem:[%s3721_s3 + $0x1a8] sm:$0xff]  ;;  %v2892_v48 = vld [vmem:[%s3721_s3 + $0x120] sm:$0xff]  ;;  %v2898_v52 = vld [vmem:[%s3721_s3 + $0x150] sm:$0xff] }
  0x1d   :  { %v2917_v46 = vld [vmem:[%s3721_s3 + $0x1e8] sm:$0xff]  ;;  %v2908_v49 = vld [vmem:[%s3721_s3 + $0x1a0] sm:$0xff]  ;;  %v2891_v56 = vld [vmem:[%s3721_s3 + $0x118] sm:$0xff] }
  0x1e   :  { %1970 = vmatmul.msk.bf16.gmra.mxu3 %vm132_vm1, %v1968_v22  ;;  %150 = vmatpush.bf16.msra.mxu0 %v2835_v23  ;;  %v2856_v22 = vld [vmem:[%s3721_s3] sm:$0xff]  ;;  %v2907_v57 = vld [vmem:[%s3721_s3 + $0x198] sm:$0xff]  ;;  %v2906_v61 = vld [vmem:[%s3721_s3 + $0x190] sm:$0xff] }
  0x1f   :  { %285 = vmatpush.bf16.msrb.mxu1 %v2838_v15  ;;  %559 = vmatpush.bf16.msra.mxu3 %v2861_v2  ;;  %v2915_v58 = vld [vmem:[%s3721_s3 + $0x1d8] sm:$0xff]  ;;  %v2914_v62 = vld [vmem:[%s3721_s3 + $0x1d0] sm:$0xff] }
  0x20   :  { %1948 = vmatmul.msk.bf16.gmra.mxu1 %vm132_vm1, %v1910_v26  ;;  %217 = vmatpush.bf16.msra.mxu2 %v2835_v23  ;;  %v2873_v26 = vld [vmem:[%s3721_s3 + $0x88] sm:$0xff] }
  0x21   :  { %151 = vmatmul.bf16.vlgmr.msra.gmra.mxu0 %v1898_v29  ;;  %v2902_v29 = vld [vmem:[%s3721_s3 + $0x170] sm:$0xff] }
  0x22   :  { %352 = vmatpush.bf16.msrb.mxu0 %v3085_v0  ;;  %v2879_v0 = vld [vmem:[%s3721_s3 + $0xb8] sm:$0xff] }
  0x23   :  { %286 = vmatpush.bf16.msrb.mxu1 %v2837_v16  ;;  %218 = vmatmul.bf16.vlgmr.msra.gmra.mxu2 %v1956_v30  ;;  %v2864_v30 = vld [vmem:[%s3721_s3 + $0x40] sm:$0xff] }
  0x24   :  { %377 = vmatpush.bf16.msrb.mxu2 %v141_v5  ;;  %v2886_v5 = vld [vmem:[%s3721_s3 + $0xf0] sm:$0xff] }
  0x26   :  { %353 = vmatpush.bf16.msrb.mxu0 %v3095_v3  ;;  %v2870_v3 = vld [vmem:[%s3721_s3 + $0x70] sm:$0xff] }
  0x27   :  { %287 = vmatpush.bf16.msrb.mxu1 %v2836_v17 }
  0x28   :  { %378 = vmatpush.bf16.msrb.mxu2 %v2843_v6  ;;  %v2860_v6 = vld [vmem:[%s3721_s3 + $0x20] sm:$0xff] }
  0x29   :  { %560 = vmatpush.bf16.msra.mxu3 %v2860_v6 }
  0x2a   :  { %354 = vmatpush.bf16.msrb.mxu0 %v2840_v7  ;;  %v2869_v7 = vld [vmem:[%s3721_s3 + $0x68] sm:$0xff] }
  0x2b   :  { %288 = vmatpush.bf16.msrb.mxu1 %v2835_v23 }
  0x2c   :  { %718 = vmatpush.bf16.msra.mxu2 %v2887_v1 }
  0x2d   :  { %561 = vmatpush.bf16.msra.mxu3 %v2859_v10 }
  0x2e   :  { %355 = vmatpush.bf16.msrb.mxu0 %v2839_v13  ;;  %1991 = vmatmul.msk.bf16.vlgmr.msrb.gmra.mxu3 %vm132_vm1, %v1982_v35  ;;  %v2884_v13 = vld [vmem:[%s3721_s3 + $0xe0] sm:$0xff]  ;;  %v2919_v35 = vld [vmem:[%s3721_s3 + $0x1f8] sm:$0xff] }
  0x2f   :  { %496 = vmatpush.bf16.msra.mxu1 %v2871_v63 }
  0x30   :  { %289 = vmatmul.bf16.vlgmr.msrb.gmra.mxu1 %v1978_v38  ;;  %719 = vmatpush.bf16.msra.mxu2 %v2886_v5  ;;  %v2910_v38 = vld [vmem:[%s3721_s3 + $0x1b0] sm:$0xff]  ;;  %v2913_v5 = vld [vmem:[%s3721_s3 + $0x1c8] sm:$0xff] }
  0x31   :  { %156 = vmatmul.bf16.gmra.mxu0 %v1906_v41  ;;  %562 = vmatpush.bf16.msra.mxu3 %v2858_v14 }
  0x32   :  { %356 = vmatpush.bf16.msrb.mxu0 %v2838_v15  ;;  %v2867_v15 = vld [vmem:[%s3721_s3 + $0x58] sm:$0xff] }
  0x33   :  { %223 = vmatmul.bf16.gmra.mxu2 %v1964_v42  ;;  %497 = vmatpush.bf16.msra.mxu1 %v2870_v3  ;;  %v2900_v42 = vld [vmem:[%s3721_s3 + $0x160] sm:$0xff]  ;;  %v2889_v3 = vld [vmem:[%s3721_s3 + $0x108] sm:$0xff] }
  0x34   :  { %720 = vmatpush.bf16.msra.mxu2 %v2885_v9  ;;  %v2912_v9 = vld [vmem:[%s3721_s3 + $0x1c0] sm:$0xff] }
  0x35   :  { %563 = vmatpush.bf16.msra.mxu3 %v2857_v18 }
  0x36   :  { %357 = vmatpush.bf16.msrb.mxu0 %v2837_v16  ;;  %v2875_v16 = vld [vmem:[%s3721_s3 + $0x98] sm:$0xff] }
  0x37   :  { %498 = vmatpush.bf16.msra.mxu1 %v2869_v7  ;;  %v2888_v7 = vld [vmem:[%s3721_s3 + $0x100] sm:$0xff] }
  0x38   :  { %721 = vmatpush.bf16.msra.mxu2 %v2884_v13 }
  0x39   :  { %564 = vmatpush.bf16.msra.mxu3 %v2856_v22 }
  0x3a   :  { %358 = vmatpush.bf16.msrb.mxu0 %v2836_v17  ;;  %v2883_v17 = vld [vmem:[%s3721_s3 + $0xd8] sm:$0xff] }
  0x3b   :  { %499 = vmatpush.bf16.msra.mxu1 %v2868_v11 }
  0x3c   :  { %722 = vmatpush.bf16.msra.mxu2 %v2883_v17 }
  0x3e   :  { %359 = vmatpush.bf16.msrb.mxu0 %v2835_v23  ;;  %1992 = vmatmul.msk.bf16.gmra.mxu3 %vm132_vm1, %v1990_v47  ;;  %v2903_v23 = vld [vmem:[%s3721_s3 + $0x178] sm:$0xff] }
  0x3f   :  { %500 = vmatpush.bf16.msra.mxu1 %v2867_v15  ;;  %881 = vmatpush.bf16.msrb.mxu3 %v2903_v23  ;;  %v2899_v47 = vld [vmem:[%s3721_s3 + $0x158] sm:$0xff] }
  0x40   :  { %294 = vmatmul.bf16.gmra.mxu1 %v1986_v50  ;;  %723 = vmatpush.bf16.msra.mxu2 %v2882_v21  ;;  %v2916_v50 = vld [vmem:[%s3721_s3 + $0x1e0] sm:$0xff] }
  0x41   :  { %360 = vmatmul.bf16.vlgmr.msrb.gmra.mxu0 %v2000_v53 }
  0x42   :  { %637 = vmatpush.bf16.msra.mxu0 %v2879_v0  ;;  %v2896_v0 = vld [vmem:[%s3721_s3 + $0x140] sm:$0xff] }
  0x43   :  { %2013 = vmatmul.msk.bf16.vlgmr.msrb.gmra.mxu2 %vm132_vm1, %v2004_v54  ;;  %501 = vmatpush.bf16.msra.mxu1 %v2866_v19 }
  0x44   :  { %724 = vmatpush.bf16.msra.mxu2 %v2881_v27  ;;  %882 = vmatpush.bf16.msrb.mxu3 %v2902_v29 }
  0x46   :  { %638 = vmatpush.bf16.msra.mxu0 %v2878_v4  ;;  %v2905_v4 = vld [vmem:[%s3721_s3 + $0x188] sm:$0xff] }
  0x47   :  { %502 = vmatpush.bf16.msra.mxu1 %v2865_v25 }
  0x48   :  { %725 = vmatpush.bf16.msra.mxu2 %v2880_v32  ;;  %883 = vmatpush.bf16.msrb.mxu3 %v2901_v36 }
  0x4a   :  { %639 = vmatpush.bf16.msra.mxu0 %v2877_v8  ;;  %v2904_v8 = vld [vmem:[%s3721_s3 + $0x180] sm:$0xff] }
  0x4b   :  { %503 = vmatpush.bf16.msra.mxu1 %v2864_v30 }
  0x4c   :  { %1043 = vmatpush.bf16.msrb.mxu2 %v2919_v35  ;;  %884 = vmatpush.bf16.msrb.mxu3 %v2900_v42  ;;  %v2935_v35 = vld [vmem:[%s3721_s3 + $0x278] sm:$0xff] }
  0x4e   :  { %640 = vmatpush.bf16.msra.mxu0 %v2876_v12 }
  0x4f   :  { %797 = vmatpush.bf16.msrb.mxu1 %v2895_v33 }
  0x50   :  { %1044 = vmatpush.bf16.msrb.mxu2 %v2918_v39  ;;  %885 = vmatpush.bf16.msrb.mxu3 %v2899_v47 }
  0x51   :  { %365 = vmatmul.bf16.gmra.mxu0 %v2008_v59  ;;  %v2897_v59 = vld [vmem:[%s3721_s3 + $0x148] sm:$0xff] }
  0x52   :  { %641 = vmatpush.bf16.msra.mxu0 %v2875_v16 }
  0x53   :  { %2014 = vmatmul.msk.bf16.gmra.mxu2 %vm132_vm1, %v2012_v60  ;;  %798 = vmatpush.bf16.msrb.mxu1 %v2894_v37  ;;  %v2890_v60 = vld [vmem:[%s3721_s3 + $0x110] sm:$0xff] }
  0x54   :  { %1045 = vmatpush.bf16.msrb.mxu2 %v2917_v46  ;;  %886 = vmatpush.bf16.msrb.mxu3 %v2898_v52 }
  0x56   :  { %642 = vmatpush.bf16.msra.mxu0 %v2874_v20 }
  0x57   :  { %799 = vmatpush.bf16.msrb.mxu1 %v2893_v44 }
  0x58   :  { %1046 = vmatpush.bf16.msrb.mxu2 %v2916_v50  ;;  %887 = vmatpush.bf16.msrb.mxu3 %v2897_v59  ;;  %v2933_v59 = vld [vmem:[%s3721_s3 + $0x268] sm:$0xff] }
  0x5a   :  { %643 = vmatpush.bf16.msra.mxu0 %v2873_v26  ;;  %v3448_v26 = vld [vmem:[%s3720_s2] ss:$0 sm:$0xff] }
  0x5b   :  { %800 = vmatpush.bf16.msrb.mxu1 %v2892_v48 }
  0x5c   :  { %1047 = vmatpush.bf16.msrb.mxu2 %v2915_v58  ;;  %888 = vmatpush.bf16.msrb.mxu3 %v2896_v0 }
  0x5e   :  { %644 = vmatpush.bf16.msra.mxu0 %v2872_v31 }
  0x5f   :  { %801 = vmatpush.bf16.msrb.mxu1 %v2891_v56 }
  0x60   :  { %1048 = vmatpush.bf16.msrb.mxu2 %v2914_v62 }
  0x62   :  { %962 = vmatpush.bf16.msrb.mxu0 %v2911_v34 }
  0x63   :  { %802 = vmatpush.bf16.msrb.mxu1 %v2890_v60 }
  0x64   :  { %1049 = vmatpush.bf16.msrb.mxu2 %v2913_v5  ;;  %v2932_v5 = vld [vmem:[%s3721_s3 + $0x260] sm:$0xff] }
  0x66   :  { %963 = vmatpush.bf16.msrb.mxu0 %v2910_v38 }
  0x67   :  { %803 = vmatpush.bf16.msrb.mxu1 %v2889_v3  ;;  %v2942_v3 = vld [vmem:[%s3721_s3 + $0x2b0] sm:$0xff] }
  0x68   :  { %1050 = vmatpush.bf16.msrb.mxu2 %v2912_v9  ;;  %v2925_v9 = vld [vmem:[%s3721_s3 + $0x228] sm:$0xff] }
  0x6a   :  { %964 = vmatpush.bf16.msrb.mxu0 %v2909_v45  ;;  %v2934_v45 = vld [vmem:[%s3721_s3 + $0x270] sm:$0xff] }
  0x6b   :  { %804 = vmatpush.bf16.msrb.mxu1 %v2888_v7 }
  0x6e   :  { %965 = vmatpush.bf16.msrb.mxu0 %v2908_v49 }
  0x72   :  { %966 = vmatpush.bf16.msrb.mxu0 %v2907_v57  ;;  %v2951_v57 = vld [vmem:[%s3721_s3 + $0x2f8] sm:$0xff] }
  0x76   :  { %967 = vmatpush.bf16.msrb.mxu0 %v2906_v61 }
  0x7a   :  { %968 = vmatpush.bf16.msrb.mxu0 %v2905_v4  ;;  %v2950_v4 = vld [vmem:[%s3721_s3 + $0x2f0] sm:$0xff] }
  0x7e   :  { %969 = vmatpush.bf16.msrb.mxu0 %v2904_v8 }
  0x8d   :  { %v3309_v24 = vpop.f32.mrf.mxu1 }
  0x91   :  { %v3320_v28 = vpop.f32.mrf.mxu3 }
  0x95   :  { %v3355_v40 = vpop.f32.mrf.mxu1 }
  0x99   :  { %v3357_v41 = vpop.f32.mrf.mxu3 }
  0x9d   :  { %v3388_v53 = vpop.f32.mrf.mxu1 }
  0x9e   :  { %v3362_v43 = vpop.f32.mrf.mxu0 }
  0x9f   :  { %v172_v17 = vadd.f32 %v3309_v24, %v3362_v43 }
  0xa1   :  { %v3390_v55 = vpop.f32.mrf.mxu3 }
  0xa5   :  { %v3416_v2 = vpop.f32.mrf.mxu1 }
  0xa6   :  { %v219_v51 = vpop.f32.mrf.mxu2  ;;  %v154_v54 = vpop.f32.mrf.mxu0 }
  0xa7   :  { %v239_v15 = vadd.f32 %v3320_v28, %v219_v51  ;;  %v174_v28 = vadd.f32 %v3355_v40, %v154_v54  ;;  %v2927_v51 = vld [vmem:[%s3721_s3 + $0x238] sm:$0xff] }
  0xa9   :  { %v3427_v6 = vpop.f32.mrf.mxu3  ;;  %v248_v19 = vmax.f32 %v172_v17, %v239_v15  ;;  %v2924_v17 = vld [vmem:[%s3721_s3 + $0x220] sm:$0xff] }
  0xad   :  { %v290_v12 = vpop.f32.mrf.mxu1 }
  0xae   :  { %v221_v63 = vpop.f32.mrf.mxu2  ;;  %v157_v1 = vpop.f32.mrf.mxu0 }
  0xaf   :  { %v241_v27 = vadd.f32 %v3357_v41, %v221_v63  ;;  %v177_v44 = vadd.f32 %v3388_v53, %v157_v1  ;;  %v2943_v53 = vld [vmem:[%s3721_s3 + $0x2b8] sm:$0xff]  ;;  %v2926_v63 = vld [vmem:[%s3721_s3 + $0x230] sm:$0xff] }
  0xb1   :  { %v309_v13 = vpop.f32.mrf.mxu3  ;;  %v249_v32 = vmax.f32 %v174_v28, %v241_v27  ;;  %v2929_v28 = vld [vmem:[%s3721_s3 + $0x248] sm:$0xff] }
  0xb2   :  { %v310_v18 = vadd.f32 %v309_v13, %v290_v12  ;;  %v2949_v12 = vld [vmem:[%s3721_s3 + $0x2e8] sm:$0xff]  ;;  %v2931_v13 = vld [vmem:[%s3721_s3 + $0x258] sm:$0xff] }
  0xb4   :  { %v319_v23 = vmax.f32 %v248_v19, %v310_v18  ;;  %v2940_v18 = vld [vmem:[%s3721_s3 + $0x2a0] sm:$0xff] }
  0xb5   :  { %v292_v20 = vpop.f32.mrf.mxu1  ;;  %v2948_v19 = vld [vmem:[%s3721_s3 + $0x2e0] sm:$0xff] }
  0xb6   :  { %v224_v10 = vpop.f32.mrf.mxu2  ;;  %v3438_v11 = vpop.f32.mrf.mxu0 }
  0xb7   :  { %v244_v39 = vadd.f32 %v3390_v55, %v224_v10  ;;  %v2941_v10 = vld [vmem:[%s3721_s3 + $0x2a8] sm:$0xff] }
  0xb9   :  { %v311_v21 = vpop.f32.mrf.mxu3  ;;  %v250_v49 = vmax.f32 %v177_v44, %v244_v39  ;;  %v2937_v39 = vld [vmem:[%s3721_s3 + $0x288] sm:$0xff]  ;;  %v179_v44 = vadd.f32 %v3416_v2, %v3438_v11  ;;  %v2944_v2 = vld [vmem:[%s3721_s3 + $0x2c0] sm:$0xff]  ;;  %v2959_v11 = vld [vmem:[%s3721_s3 + $0x338] sm:$0xff] }
  0xba   :  { %v312_v30 = vadd.f32 %v311_v21, %v292_v20  ;;  %v2930_v20 = vld [vmem:[%s3721_s3 + $0x250] sm:$0xff] }
  0xbc   :  { %v320_v36 = vmax.f32 %v249_v32, %v312_v30  ;;  %v2946_v32 = vld [vmem:[%s3721_s3 + $0x2d0] sm:$0xff] }
  0xbd   :  { %v295_v41 = vpop.f32.mrf.mxu1 }
  0xbe   :  { %v3440_v14 = vpop.f32.mrf.mxu2  ;;  %v361_v16 = vpop.f32.mrf.mxu0 }
  0xc1   :  { %v314_v42 = vpop.f32.mrf.mxu3 }
  0xc2   :  { %v315_v46 = vadd.f32 %v314_v42, %v295_v41  ;;  %v246_v41 = vadd.f32 %v3427_v6, %v3440_v14  ;;  %v2945_v42 = vld [vmem:[%s3721_s3 + $0x2c8] sm:$0xff]  ;;  %v2920_v6 = vld [vmem:[%s3721_s3 + $0x200] sm:$0xff] }
  0xc3   :  { %v2936_v14 = vld [vmem:[%s3721_s3 + $0x280] sm:$0xff] }
  0xc4   :  { %v321_v60 = vmax.f32 %v250_v49, %v315_v46 }
  0xc6   :  { %v380_v22 = vpop.f32.mrf.mxu2  ;;  %v363_v31 = vpop.f32.mrf.mxu0 }
  0xc7   :  { %v381_v25 = vadd.f32 %v380_v22, %v361_v16  ;;  %v2923_v22 = vld [vmem:[%s3721_s3 + $0x218] sm:$0xff] }
  0xc9   :  { %v390_v29 = vmax.f32 %v319_v23, %v381_v25  ;;  %v2939_v23 = vld [vmem:[%s3721_s3 + $0x298] sm:$0xff] }
  0xcb   :  { %v398_v24 = vadd.f32 %v3448_v26, %v390_v29  ;;  %v2947_v29 = vld [vmem:[%s3721_s3 + $0x2d8] sm:$0xff] }
  0xcd   :  { %v402_v33 = vmax.f32 %v398_v24, 0.0  ;;  %v2922_v24 = vld [vmem:[%s3721_s3 + $0x210] sm:$0xff] }
  0xce   :  { %v382_v34 = vpop.f32.mrf.mxu2  ;;  %v366_v50 = vpop.f32.mrf.mxu0 }
  0xcf   :  { %v406_v37 = vpack.c.bf16 %v402_v33, %v402_v33  ;;  %v383_v38 = vadd.f32 %v382_v34, %v363_v31  ;;  %v2938_v31 = vld [vmem:[%s3721_s3 + $0x290] sm:$0xff]  ;;  %v2928_v33 = vld [vmem:[%s3721_s3 + $0x240] sm:$0xff] }
  0xd1   :  { %v444_v43 = vunpack.c.l.b16 %v406_v37  ;;  %v391_v40 = vmax.f32 %v320_v36, %v383_v38  ;;  %565 = vmatmul.bf16.vlgmr.msra.gmra.mxu3 %v406_v37  ;;  %v297_v36 = vpop.f32.mrf.mxu1  ;;  %v316_v37 = vpop.f32.mrf.mxu3  ;;  %v2921_v38 = vld [vmem:[%s3721_s3 + $0x208] sm:$0xff] }
  0xd2   :  { %1206 = vmatpush.bf16.msra.mxu3 %v2935_v35  ;;  %v2967_v35 = vld [vmem:[%s3721_s3 + $0x378] sm:$0xff] }
  0xd3   :  { %v445_v47 = vpack.c.b16 %v444_v43, %v444_v43  ;;  %v399_v48 = vadd.f32 %v3448_v26, %v391_v40 }
  0xd5   :  { %v403_v52 = vmax.f32 %v399_v48, 0.0  ;;  %v446_v54 = vrot.slane %v445_v47, 1  ;;  %v587_v55 = vrot.slane %v445_v47, 2  ;;  %v668_v56 = vrot.slane %v445_v47, 3  ;;  %v2966_v47 = vld [vmem:[%s3721_s3 + $0x370] sm:$0xff] }
  0xd6   :  { %1207 = vmatpush.bf16.msra.mxu3 %v2934_v45  ;;  %v385_v58 = vpop.f32.mrf.mxu2  ;;  %v368_v43 = vpop.f32.mrf.mxu0  ;;  %v317_v45 = vadd.f32 %v316_v37, %v297_v36  ;;  %v251_v48 = vmax.f32 %v179_v44, %v246_v41  ;;  %v2989_v44 = vld [vmem:[%s3723_s5 + $0x28] sm:$0xff] }
  0xd7   :  { %v407_v61 = vpack.c.bf16 %v403_v52, %v403_v52  ;;  %v386_v62 = vadd.f32 %v385_v58, %v366_v50  ;;  %504 = vmatmul.bf16.vlgmr.msra.gmra.mxu1 %v446_v54  ;;  %645 = vmatmul.bf16.vlgmr.msra.gmra.mxu0 %v587_v55  ;;  %v2975_v50 = vld [vmem:[%s3721_s3 + $0x3b8] sm:$0xff]  ;;  %v2965_v54 = vld [vmem:[%s3721_s3 + $0x368] sm:$0xff]  ;;  %v2974_v58 = vld [vmem:[%s3721_s3 + $0x3b0] sm:$0xff] }
  0xd8   :  { %726 = vmatmul.bf16.vlgmr.msra.gmra.mxu2 %v668_v56  ;;  %1122 = vmatpush.bf16.msra.mxu1 %v2927_v51  ;;  %v2983_v51 = vld [vmem:[%s3721_s3 + $0x3f8] sm:$0xff]  ;;  %v322_v52 = vmax.f32 %v251_v48, %v317_v45  ;;  %v2958_v56 = vld [vmem:[%s3721_s3 + $0x330] sm:$0xff]  ;;  %v2988_v45 = vld [vmem:[%s3723_s5 + $0x20] sm:$0xff] }
  0xd9   :  { %v829_v0 = vunpack.c.l.b16 %v407_v61  ;;  %v392_v1 = vmax.f32 %v321_v60, %v386_v62  ;;  %1287 = vmatpush.bf16.msra.mxu0 %v2943_v53  ;;  %1368 = vmatpush.bf16.msra.mxu2 %v2951_v57  ;;  %v2964_v60 = vld [vmem:[%s3721_s3 + $0x360] sm:$0xff]  ;;  %v2957_v62 = vld [vmem:[%s3721_s3 + $0x328] sm:$0xff] }
  0xda   :  { %1208 = vmatpush.bf16.msra.mxu3 %v2933_v59  ;;  %v2982_v59 = vld [vmem:[%s3721_s3 + $0x3f0] sm:$0xff] }
  0xdb   :  { %v830_v7 = vpack.c.b16 %v829_v0, %v829_v0  ;;  %v400_v8 = vadd.f32 %v3448_v26, %v392_v1  ;;  %v2981_v0 = vld [vmem:[%s3721_s3 + $0x3e8] sm:$0xff] }
  0xdc   :  { %1123 = vmatpush.bf16.msra.mxu1 %v2926_v63  ;;  %v2973_v63 = vld [vmem:[%s3721_s3 + $0x3a8] sm:$0xff] }
  0xdd   :  { %1288 = vmatpush.bf16.msra.mxu0 %v2942_v3  ;;  %1369 = vmatpush.bf16.msra.mxu2 %v2950_v4  ;;  %v404_v15 = vmax.f32 %v400_v8, 0.0  ;;  %v831_v16 = vrot.slane %v830_v7, 1  ;;  %v912_v25 = vrot.slane %v830_v7, 2  ;;  %v993_v27 = vrot.slane %v830_v7, 3  ;;  %v2956_v3 = vld [vmem:[%s3721_s3 + $0x320] sm:$0xff]  ;;  %v2962_v7 = vld [vmem:[%s3721_s3 + $0x350] sm:$0xff] }
  0xde   :  { %1209 = vmatpush.bf16.msra.mxu3 %v2932_v5  ;;  %v387_v40 = vpop.f32.mrf.mxu2  ;;  %v2972_v4 = vld [vmem:[%s3721_s3 + $0x3a0] sm:$0xff] }
  0xdf   :  { %v3511_v21 = vpack.c.bf16 %v404_v15, %v404_v15  ;;  %v388_v49 = vadd.f32 %v387_v40, %v368_v43  ;;  %v2980_v5 = vld [vmem:[%s3721_s3 + $0x3e0] sm:$0xff] }
  0xe0   :  { %1124 = vmatpush.bf16.msra.mxu1 %v2925_v9  ;;  %v2955_v9 = vld [vmem:[%s3721_s3 + $0x318] sm:$0xff] }
  0xe1   :  { %1289 = vmatpush.bf16.msra.mxu0 %v2941_v10  ;;  %1370 = vmatpush.bf16.msra.mxu2 %v2949_v12  ;;  %v1154_v30 = vunpack.c.l.b16 %v3511_v21  ;;  %v393_v55 = vmax.f32 %v322_v52, %v388_v49  ;;  %v2971_v10 = vld [vmem:[%s3721_s3 + $0x398] sm:$0xff] }
  0xe2   :  { %889 = vmatmul.bf16.vlgmr.msrb.gmra.mxu3 %v831_v16  ;;  %v2979_v12 = vld [vmem:[%s3721_s3 + $0x3d8] sm:$0xff]  ;;  %v2954_v16 = vld [vmem:[%s3721_s3 + $0x310] sm:$0xff] }
  0xe3   :  { %1210 = vmatpush.bf16.msra.mxu3 %v2931_v13  ;;  %v1155_v34 = vpack.c.b16 %v1154_v30, %v1154_v30  ;;  %v2961_v13 = vld [vmem:[%s3721_s3 + $0x348] sm:$0xff]  ;;  %v2987_v49 = vld [vmem:[%s3723_s5 + $0x18] sm:$0xff] }
  0xe4   :  { %1125 = vmatpush.bf16.msra.mxu1 %v2924_v17  ;;  %v2970_v17 = vld [vmem:[%s3721_s3 + $0x390] sm:$0xff] }
  0xe5   :  { %1290 = vmatpush.bf16.msra.mxu0 %v2940_v18  ;;  %1371 = vmatpush.bf16.msra.mxu2 %v2948_v19  ;;  %v1156_v46 = vrot.slane %v1155_v34, 1  ;;  %v1237_v53 = vrot.slane %v1155_v34, 2  ;;  %v1318_v57 = vrot.slane %v1155_v34, 3  ;;  %v2978_v18 = vld [vmem:[%s3721_s3 + $0x3d0] sm:$0xff]  ;;  %v2960_v19 = vld [vmem:[%s3721_s3 + $0x340] sm:$0xff] }
  0xe7   :  { %1211 = vmatpush.bf16.msra.mxu3 %v2930_v20  ;;  %805 = vmatmul.bf16.vlgmr.msrb.gmra.mxu1 %v407_v61  ;;  %v401_v61 = vadd.f32 %v3448_v26, %v393_v55  ;;  %v2963_v26 = vld [vmem:[%s3721_s3 + $0x358] sm:$0xff] }
  0xe8   :  { %970 = vmatmul.bf16.vlgmr.msrb.gmra.mxu0 %v912_v25  ;;  %1051 = vmatmul.bf16.vlgmr.msrb.gmra.mxu2 %v993_v27  ;;  %v2952_v27 = vld [vmem:[%s3721_s3 + $0x300] sm:$0xff] }
  0xe9   :  { %1126 = vmatpush.bf16.msra.mxu1 %v2923_v22  ;;  %1291 = vmatpush.bf16.msra.mxu0 %v2939_v23  ;;  %v405_v1 = vmax.f32 %v401_v61, 0.0  ;;  %v2969_v22 = vld [vmem:[%s3721_s3 + $0x388] sm:$0xff]  ;;  %v2984_v61 = vld [vmem:[%s3723_s5] sm:$0xff] }
  0xea   :  { %1372 = vmatpush.bf16.msra.mxu2 %v2947_v29  ;;  %v2977_v23 = vld [vmem:[%s3721_s3 + $0x3c8] sm:$0xff]  ;;  %v2968_v29 = vld [vmem:[%s3721_s3 + $0x380] sm:$0xff] }
  0xeb   :  { %1212 = vmatpush.bf16.msra.mxu3 %v2929_v28  ;;  %v409_v8 = vpack.c.bf16 %v405_v1, %v405_v1  ;;  %v2976_v28 = vld [vmem:[%s3721_s3 + $0x3c0] sm:$0xff] }
  0xed   :  { %1127 = vmatpush.bf16.msra.mxu1 %v2922_v24  ;;  %1292 = vmatpush.bf16.msra.mxu0 %v2938_v31  ;;  %v1479_v15 = vunpack.c.l.b16 %v409_v8 }
  0xee   :  { %1373 = vmatpush.bf16.msra.mxu2 %v2946_v32 }
  0xef   :  { %1213 = vmatpush.bf16.msra.mxu3 %v2928_v33  ;;  %v1480_v20 = vpack.c.b16 %v1479_v15, %v1479_v15 }
  0xf1   :  { %1128 = vmatpush.bf16.msra.mxu1 %v2921_v38  ;;  %1293 = vmatpush.bf16.msra.mxu0 %v2937_v39  ;;  %v1481_v25 = vrot.slane %v1480_v20, 1  ;;  %v1562_v30 = vrot.slane %v1480_v20, 2  ;;  %v1643_v24 = vrot.slane %v1480_v20, 3  ;;  %v2991_v38 = vld [vmem:[%s3723_s5 + $0x38] sm:$0xff] }
  0xf2   :  { %1374 = vmatpush.bf16.msra.mxu2 %v2945_v42  ;;  %1214 = vmatmul.bf16.vlgmr.msra.gmra.mxu3 %v1156_v46  ;;  %v2990_v42 = vld [vmem:[%s3723_s5 + $0x30] sm:$0xff] }
  0xf3   :  { %1531 = vmatpush.bf16.msrb.mxu3 %v2967_v35 }
  0xf5   :  { %1129 = vmatpush.bf16.msra.mxu1 %v2920_v6  ;;  %1294 = vmatpush.bf16.msra.mxu0 %v2936_v14 }
  0xf6   :  { %1375 = vmatpush.bf16.msra.mxu2 %v2944_v2 }
  0xf7   :  { %1532 = vmatpush.bf16.msrb.mxu3 %v2966_v47 }
  0xf8   :  { %1130 = vmatmul.bf16.vlgmr.msra.gmra.mxu1 %v3511_v21  ;;  %1295 = vmatmul.bf16.vlgmr.msra.gmra.mxu0 %v1237_v53  ;;  %v2953_v21 = vld [vmem:[%s3721_s3 + $0x308] sm:$0xff] }
  0xf9   :  { %1447 = vmatpush.bf16.msrb.mxu1 %v2959_v11  ;;  %1612 = vmatpush.bf16.msrb.mxu0 %v2975_v50  ;;  %v2985_v53 = vld [vmem:[%s3723_s5 + $0x8] sm:$0xff] }
  0xfa   :  { %1693 = vmatpush.bf16.msrb.mxu2 %v2983_v51 }
  0xfb   :  { %1533 = vmatpush.bf16.msrb.mxu3 %v2965_v54  ;;  %1376 = vmatmul.bf16.vlgmr.msra.gmra.mxu2 %v1318_v57  ;;  %v2986_v54 = vld [vmem:[%s3723_s5 + $0x10] sm:$0xff] }
  0xfd   :  { %1448 = vmatpush.bf16.msrb.mxu1 %v2958_v56  ;;  %1613 = vmatpush.bf16.msrb.mxu0 %v2974_v58 }
  0xfe   :  { %1694 = vmatpush.bf16.msrb.mxu2 %v2982_v59 }
  0xff   :  { %1534 = vmatpush.bf16.msrb.mxu3 %v2964_v60 }
 0x101   :  { %1449 = vmatpush.bf16.msrb.mxu1 %v2957_v62  ;;  %1614 = vmatpush.bf16.msrb.mxu0 %v2973_v63 }
 0x102   :  { %1695 = vmatpush.bf16.msrb.mxu2 %v2981_v0  ;;  %v2999_v0 = vld [vmem:[%s3725_s7 + $0x38] sm:$0xff] }
 0x103   :  { %1535 = vmatpush.bf16.msrb.mxu3 %v2963_v26 }
 0x105   :  { %1450 = vmatpush.bf16.msrb.mxu1 %v2956_v3  ;;  %1615 = vmatpush.bf16.msrb.mxu0 %v2972_v4  ;;  %v2998_v3 = vld [vmem:[%s3725_s7 + $0x30] sm:$0xff] }
 0x106   :  { %1696 = vmatpush.bf16.msrb.mxu2 %v2980_v5  ;;  %v2997_v5 = vld [vmem:[%s3725_s7 + $0x28] sm:$0xff] }
 0x107   :  { %1536 = vmatpush.bf16.msrb.mxu3 %v2962_v7 }
 0x109   :  { %1451 = vmatpush.bf16.msrb.mxu1 %v2955_v9  ;;  %1616 = vmatpush.bf16.msrb.mxu0 %v2971_v10  ;;  %v2995_v10 = vld [vmem:[%s3725_s7 + $0x18] sm:$0xff] }
 0x10a   :  { %1697 = vmatpush.bf16.msrb.mxu2 %v2979_v12 }
 0x10b   :  { %1537 = vmatpush.bf16.msrb.mxu3 %v2961_v13 }
 0x10d   :  { %1452 = vmatpush.bf16.msrb.mxu1 %v2954_v16  ;;  %1617 = vmatpush.bf16.msrb.mxu0 %v2970_v17 }
 0x10e   :  { %1698 = vmatpush.bf16.msrb.mxu2 %v2978_v18  ;;  %v2994_v18 = vld [vmem:[%s3725_s7 + $0x10] sm:$0xff] }
 0x10f   :  { %1538 = vmatpush.bf16.msrb.mxu3 %v2960_v19 }
 0x111   :  { %1453 = vmatpush.bf16.msrb.mxu1 %v2953_v21  ;;  %1618 = vmatpush.bf16.msrb.mxu0 %v2969_v22  ;;  %v3002_v21 = vld [vmem:[%s3722_s4] ss:$0 sm:$0xff] }
 0x112   :  { %1699 = vmatpush.bf16.msrb.mxu2 %v2977_v23  ;;  %1539 = vmatmul.bf16.vlgmr.msrb.gmra.mxu3 %v1481_v25 }
 0x113   :  { %1865 = vmatpush.bf16.msra.mxu3 %v2999_v0 }
 0x115   :  { %1454 = vmatpush.bf16.msrb.mxu1 %v2952_v27  ;;  %1619 = vmatpush.bf16.msrb.mxu0 %v2968_v29 }
 0x116   :  { %1700 = vmatpush.bf16.msrb.mxu2 %v2976_v28 }
 0x117   :  { %1866 = vmatpush.bf16.msra.mxu3 %v2998_v3 }
 0x118   :  { %1455 = vmatmul.bf16.vlgmr.msrb.gmra.mxu1 %v409_v8  ;;  %1620 = vmatmul.bf16.vlgmr.msrb.gmra.mxu0 %v1562_v30  ;;  %v2996_v8 = vld [vmem:[%s3725_s7 + $0x20] sm:$0xff] }
 0x119   :  { %1701 = vmatmul.bf16.vlgmr.msrb.gmra.mxu2 %v1643_v24  ;;  %1782 = vmatpush.bf16.msra.mxu1 %v2991_v38 }
 0x11b   :  { %1867 = vmatpush.bf16.msra.mxu3 %v2997_v5 }
 0x11d   :  { %1783 = vmatpush.bf16.msra.mxu1 %v2990_v42 }
 0x11f   :  { %1868 = vmatpush.bf16.msra.mxu3 %v2996_v8 }
 0x121   :  { %1784 = vmatpush.bf16.msra.mxu1 %v2989_v44 }
 0x123   :  { %1869 = vmatpush.bf16.msra.mxu3 %v2995_v10 }
 0x125   :  { %1785 = vmatpush.bf16.msra.mxu1 %v2988_v45 }
 0x127   :  { %1870 = vmatpush.bf16.msra.mxu3 %v2994_v18 }
 0x129   :  { %1786 = vmatpush.bf16.msra.mxu1 %v2987_v49 }
 0x12d   :  { %1787 = vmatpush.bf16.msra.mxu1 %v2986_v54 }
 0x131   :  { %1788 = vmatpush.bf16.msra.mxu1 %v2985_v53 }
 0x135   :  { %1789 = vmatpush.bf16.msra.mxu1 %v2984_v61 }
 0x154   :  { %v505_v31 = vpop.f32.mrf.mxu1  ;;  %v566_v32 = vpop.f32.mrf.mxu3 }
 0x155   :  { %v646_v33 = vpop.f32.mrf.mxu0  ;;  %v567_v48 = vadd.f32 %v566_v32, %v505_v31  ;;  %v2993_v32 = vld [vmem:[%s3725_s7 + $0x8] sm:$0xff] }
 0x156   :  { %1871 = vmatpush.bf16.msra.mxu3 %v2993_v32 }
 0x157   :  { %v650_v2 = vadd.f32 %v646_v33, %v567_v48  ;;  %v2992_v33 = vld [vmem:[%s3725_s7] sm:$0xff]  ;;  %s1886_s7 = sshll.u32 %s3727_s9, 4  ;;  %s1887_s7 = int_to_ptr.hbm [resolvable:$true] %s1886_s7 }
 0x15a   :  { %1872 = vmatpush.bf16.msra.mxu3 %v2992_v33 }
 0x15b   :  { %v727_v34 = vpop.f32.mrf.mxu2 }
 0x15c   :  { %v507_v35 = vpop.f32.mrf.mxu1  ;;  %v568_v36 = vpop.f32.mrf.mxu3  ;;  %v731_v50 = vadd.f32 %v727_v34, %v650_v2  ;;  %v3003_v34 = vld [vmem:[%s3724_s6] ss:$0 sm:$0xff] }
 0x15d   :  { %v648_v37 = vpop.f32.mrf.mxu0 }
 0x163   :  { %v729_v39 = vpop.f32.mrf.mxu2 }
 0x164   :  { %v806_v41 = vpop.f32.mrf.mxu1 }
 0x165   :  { %v890_v43 = vpop.f32.mrf.mxu3  ;;  %v971_v40 = vpop.f32.mrf.mxu0  ;;  %v810_v56 = vadd.f32 %v806_v41, %v731_v50  ;;  %v3004_v41 = vld [vmem:[%s3726_s8] ss:$0 sm:$0xff] }
 0x167   :  { %v894_v57 = vadd.f32 %v890_v43, %v810_v56 }
 0x169   :  { %v975_v63 = vadd.f32 %v971_v40, %v894_v57 }
 0x16b   :  { %v1052_v46 = vpop.f32.mrf.mxu2 }
 0x16c   :  { %v808_v47 = vpop.f32.mrf.mxu1  ;;  %v1056_v26 = vadd.f32 %v1052_v46, %v975_v63 }
 0x16d   :  { %v892_v6 = vpop.f32.mrf.mxu3  ;;  %v973_v14 = vpop.f32.mrf.mxu0 }
 0x173   :  { %v1054_v11 = vpop.f32.mrf.mxu2 }
 0x175   :  { %v1131_v51 = vpop.f32.mrf.mxu1  ;;  %v1215_v52 = vpop.f32.mrf.mxu3 }
 0x176   :  { %v1296_v55 = vpop.f32.mrf.mxu0  ;;  %v1135_v4 = vadd.f32 %v1131_v51, %v1056_v26 }
 0x178   :  { %v1219_v7 = vadd.f32 %v1215_v52, %v1135_v4 }
 0x17a   :  { %v1300_v9 = vadd.f32 %v1296_v55, %v1219_v7 }
 0x17d   :  { %v1133_v59 = vpop.f32.mrf.mxu1  ;;  %v1217_v60 = vpop.f32.mrf.mxu3 }
 0x17e   :  { %v1377_v58 = vpop.f32.mrf.mxu2  ;;  %v1298_v62 = vpop.f32.mrf.mxu0 }
 0x17f   :  { %v1381_v12 = vadd.f32 %v1377_v58, %v1300_v9 }
 0x186   :  { %v1379_v1 = vpop.f32.mrf.mxu2 }
 0x195   :  { %v1456_v13 = vpop.f32.mrf.mxu1  ;;  %v1540_v16 = vpop.f32.mrf.mxu3 }
 0x196   :  { %v1460_v15 = vadd.f32 %v1456_v13, %v1381_v12  ;;  %v1621_v17 = vpop.f32.mrf.mxu0 }
 0x198   :  { %v1544_v19 = vadd.f32 %v1540_v16, %v1460_v15 }
 0x19a   :  { %v1625_v20 = vadd.f32 %v1621_v17, %v1544_v19 }
 0x19c   :  { %v1702_v22 = vpop.f32.mrf.mxu2 }
 0x19d   :  { %v1706_v23 = vadd.f32 %v1702_v22, %v1625_v20  ;;  %v1458_v25 = vpop.f32.mrf.mxu1  ;;  %v1542_v27 = vpop.f32.mrf.mxu3 }
 0x19e   :  { %v1623_v29 = vpop.f32.mrf.mxu0 }
 0x19f   :  { %v1711_v28 = vadd.f32 %v3002_v21, %v1706_v23 }
 0x1a1   :  { %v1712_v30 = vmax.f32 %v1711_v28, 0.0 }
 0x1a3   :  { %v1713_v24 = vpack.c.bf16 %v1712_v30, %v1712_v30 }
 0x1a4   :  { %v1704_v31 = vpop.f32.mrf.mxu2 }
 0x1a5   :  { %1790 = vmatmul.bf16.vlgmr.msra.gmra.mxu1 %v1713_v24 }
 0x222   :  { %v1791_v35 = vpop.f32.mrf.mxu1 }
 0x223   :  { %v1792_v36 = vadd.f32 %v3003_v34, %v1791_v35 }
 0x225   :  { %v1795_v37 = vmax.f32 %v1792_v36, 0.0 }
 0x227   :  { %v1796_v38 = vpack.c.bf16 %v1795_v37, %v1795_v37 }
 0x229   :  { %1873 = vmatmul.bf16.vlgmr.msra.gmra.mxu3 %v1796_v38 }
 0x22a   :  { %v1793_v39 = vpop.f32.mrf.mxu1 }
 0x2ac   :  { %v1874_v42 = vpop.f32.mrf.mxu3 }
 0x2ad   :  { %v1875_v43 = vadd.f32 %v3004_v41, %v1874_v42 }
 0x2af   :  { %1878 = vst [vmem:[#allocation2] sm:$0x3] %v1875_v43 }
 0x2b0   :  { %1889 = dma.vmem_to_hbm [thread:$0]  %s1885_s15, 32, %s1887_s7, [#allocation3]  }
 0x2b4   :  { %v1876_v40 = vpop.f32.mrf.mxu3 }
 0x2b5   :  { %3029 = dma.done.wait [#allocation3], 32  }
 0x2b6   :  { %3030 = vsyncadd [#allocation3], 4294967264 }
 0x2b7   :  { %1894 = vsyncpa [#allocation3], 1 }

</bundles_post_ra>
